<compile_context>
chip_gen: v7x
topology: tpu7x:2x2x1
jax: 0.10.0
libtpu: 0.0.40
codegen_flags: <defaults>
</compile_context>

<pallas_src>
import functools

import jax
import jax.numpy as jnp
from jax.experimental import pallas as pl
from jax.experimental.pallas import tpu as pltpu


def _round_up(x, m):
    return ((x + m - 1) // m) * m


# -----------------------------------------------------------------------------
# Fused Pallas kernel: stem matmul -> pointwise matmul -> pool accumulation
# (analytic pad-row correction) -> fc head.  Grid = (split, batch, S-tiles).
# -----------------------------------------------------------------------------
def _fused_i3d_kernel(a_ref, w1_ref, b1_ref, w2_ref, b2_ref, wfc_ref, bfc_ref,
                      o_ref, acc_ref, *, s_valid, tile_rows, rows_per_split,
                      pad_rows_total):
    sp = pl.program_id(0)          # split index (v7x dual-core utilisation)
    s_idx = pl.program_id(2)       # S-tile index within this split
    n_s = pl.num_programs(2)

    @pl.when(s_idx == 0)
    def _():
        acc_ref[...] = jnp.zeros_like(acc_ref)

    # Stem conv as matmul (bf16 operands, f32 accumulation) + bias + ReLU.
    a = a_ref[0]                                               # (tile, Kpad) bf16
    h1 = jnp.dot(a, w1_ref[...], preferred_element_type=jnp.float32)
    h1 = jnp.maximum(h1 + b1_ref[...], 0.0)                    # (tile, C1p) f32

    # Pointwise conv + bias + ReLU; h1 stays f32 (accuracy) and never hits HBM.
    h2 = jnp.dot(h1, w2_ref[...], preferred_element_type=jnp.float32)
    h2 = jnp.maximum(h2 + b2_ref[...], 0.0)                    # (tile, C2p) f32

    # 8-sublane-tall partial sums: full-vreg VALU adds only in the hot loop.
    c2p = acc_ref.shape[1]
    acc_ref[...] += jnp.sum(h2.reshape(tile_rows // 8, 8, c2p), axis=0)

    @pl.when(s_idx == n_s - 1)
    def _():
        # Single cross-sublane reduction, once per (split, batch).
        total = jnp.sum(acc_ref[...], axis=0, keepdims=True)   # (1, C2p)
        if pad_rows_total > 0:
            # Zero-padded patch rows each contributed relu(relu(b1)@w2 + b2);
            # subtract that constant analytically (no per-tile row mask).
            pad_h1 = jnp.maximum(b1_ref[...], 0.0)              # (1, C1p)
            pad_h2 = jnp.maximum(
                jnp.dot(pad_h1, w2_ref[...],
                        preferred_element_type=jnp.float32) + b2_ref[...], 0.0)
            n_pad = jnp.clip((sp + 1) * rows_per_split - s_valid,
                             0, rows_per_split).astype(jnp.float32)
            total = total - n_pad * pad_h2
        pooled = total * (1.0 / float(s_valid))                 # partial mean
        # fc head; bias added only by split 0 so per-split logits just sum.
        bias = bfc_ref[...] * (sp == 0).astype(jnp.float32)
        logits = jnp.dot(pooled, wfc_ref[...],
                         preferred_element_type=jnp.float32) + bias
        # 8-sublane broadcast -> unmasked full-vreg store.
        o_ref[...] = jnp.broadcast_to(logits.reshape(1, 1, 1, -1), o_ref.shape)


def fused_i3d_head(patches, w1s, b1, w2s, b2, wfc, bfc, *,
                   s_valid, tile_rows, n_split):
    """patches: (n, S_pad, Kpad) bf16 -> per-split partial logits
    (n_split, n, 8, NCp) f32; wrapper sums over splits."""
    n, s_pad_total, k_pad = patches.shape
    c1p = w1s.shape[1]
    c2p = w2s.shape[1]
    ncp = wfc.shape[1]
    assert s_pad_total % (n_split * tile_rows) == 0
    rows_per_split = s_pad_total // n_split
    n_s_tiles = rows_per_split // tile_rows

    kernel = functools.partial(
        _fused_i3d_kernel, s_valid=s_valid, tile_rows=tile_rows,
        rows_per_split=rows_per_split,
        pad_rows_total=s_pad_total - s_valid)

    return pl.pallas_call(
        kernel,
        out_shape=jax.ShapeDtypeStruct((n_split, n, 8, ncp), jnp.float32),
        grid_spec=pltpu.PrefetchScalarGridSpec(
            num_scalar_prefetch=0,
            grid=(n_split, n, n_s_tiles),
            in_specs=[
                pl.BlockSpec((1, tile_rows, k_pad),
                             lambda sp, b, s: (b, sp * n_s_tiles + s, 0)),
                pl.BlockSpec((k_pad, c1p), lambda sp, b, s: (0, 0)),
                pl.BlockSpec((1, c1p), lambda sp, b, s: (0, 0)),
                pl.BlockSpec((c1p, c2p), lambda sp, b, s: (0, 0)),
                pl.BlockSpec((1, c2p), lambda sp, b, s: (0, 0)),
                pl.BlockSpec((c2p, ncp), lambda sp, b, s: (0, 0)),
                pl.BlockSpec((1, ncp), lambda sp, b, s: (0, 0)),
            ],
            out_specs=pl.BlockSpec((1, 1, 8, ncp),
                                   lambda sp, b, s: (sp, b, 0, 0)),
            scratch_shapes=[pltpu.VMEM((8, c2p), jnp.float32)],
        ),
        compiler_params=pltpu.CompilerParams(
            dimension_semantics=("parallel", "parallel", "arbitrary")),
    )(patches, w1s, b1, w2s, b2, wfc, bfc)


# -----------------------------------------------------------------------------
# Glue: im2col for the 3-D stem conv (channels-last).  Kernel path feeds bf16
# so all intermediates here are bf16 (half the glue HBM bytes).
# TODO(synk): replace with an in-kernel 27-tap conv over a pl.ANY HBM ref to
# remove the im2col HBM blow-up entirely.
# -----------------------------------------------------------------------------
def im2col_3d(x, ksize, stride, pad):
    """x: (N, T, H, W, C) -> patches (N, To*Ho*Wo, kt*kh*kw*C), dtype of x."""
    n, t, h, w, c = x.shape
    kt, kh, kw = ksize
    st, sh, sw = stride
    pt, ph, pw = pad
    xp = jnp.pad(x, ((0, 0), (pt, pt), (ph, ph), (pw, pw), (0, 0)))
    to = (t + 2 * pt - kt) // st + 1
    ho = (h + 2 * ph - kh) // sh + 1
    wo = (w + 2 * pw - kw) // sw + 1
    slabs = []
    for it in range(kt):
        for ih in range(kh):
            for iw in range(kw):
                slabs.append(
                    xp[:, it:it + to * st:st, ih:ih + ho * sh:sh,
                       iw:iw + wo * sw:sw, :])
    patches = jnp.concatenate(slabs, axis=-1)      # (N, To, Ho, Wo, kt*kh*kw*C)
    return patches.reshape(n, to * ho * wo, kt * kh * kw * c), (to, ho, wo)


# -----------------------------------------------------------------------------
# Deterministic synthetic parameters (not a pretrained checkpoint)
# -----------------------------------------------------------------------------
def make_params(num_classes, c_in=3, c1=32, c2=64, eps=1e-5):
    key = jax.random.PRNGKey(0)
    ks = jax.random.split(key, 12)

    def bn_fold(kg, kb, km, kv, c):
        gamma = 1.0 + 0.1 * jax.random.normal(kg, (c,), jnp.float32)
        beta = 0.1 * jax.random.normal(kb, (c,), jnp.float32)
        mean = 0.1 * jax.random.normal(km, (c,), jnp.float32)
        var = 1.0 + 0.1 * jax.random.uniform(kv, (c,), jnp.float32)
        scale = gamma / jnp.sqrt(var + eps)
        bias = beta - mean * scale
        return scale, bias

    k1 = 3 * 3 * 3 * c_in
    w1 = 0.05 * jax.random.normal(ks[0], (k1, c1), jnp.float32)
    s1, b1 = bn_fold(ks[1], ks[2], ks[3], ks[4], c1)

    w2 = 0.05 * jax.random.normal(ks[5], (c1, c2), jnp.float32)
    s2, b2 = bn_fold(ks[6], ks[7], ks[8], ks[9], c2)

    wfc = 0.05 * jax.random.normal(ks[10], (c2, num_classes), jnp.float32)
    bfc = 0.01 * jax.random.normal(ks[11], (num_classes,), jnp.float32)

    return dict(w1=w1, s1=s1, b1=b1, w2=w2, s2=s2, b2=b2, wfc=wfc, bfc=bfc)


def _pad_mat(a, rows, cols, dtype):
    return jnp.pad(a, ((0, rows - a.shape[0]), (0, cols - a.shape[1]))).astype(dtype)


def _pad_vec(v, cols, dtype):
    return jnp.pad(v, (0, cols - v.shape[0])).reshape(1, cols).astype(dtype)


# -----------------------------------------------------------------------------
# Forward pass (mirrors I3DModel.forward: backbone features -> replaced fc)
# -----------------------------------------------------------------------------
def i3d_forward(x_ncdhw, params, *, tile_s=4096, n_split=None):
    # PyTorch NCDHW -> channels-last (N, T, H, W, C), cast to bf16 up front so
    # the im2col glue intermediates are bf16 (MXU consumes bf16 anyway).
    x = jnp.transpose(x_ncdhw, (0, 2, 3, 4, 1)).astype(jnp.bfloat16)
    n = x.shape[0]
    num_classes = params["wfc"].shape[1]
    if n_split is None:
        n_split = 2 if n < 2 else 1   # keep both v7x TensorCores busy at batch 1

    # im2col glue for the stem conv (stride (1,2,2), pad 1).
    patches, (to, ho, wo) = im2col_3d(x, (3, 3, 3), (1, 2, 2), (1, 1, 1))
    s = to * ho * wo
    k = patches.shape[-1]

    # Lane-dense padding: K and channel axes to multiples of exactly 128.
    k_pad = _round_up(k, 128)
    c1p = _round_up(params["w1"].shape[1], 128)
    c2p = _round_up(params["w2"].shape[1], 128)
    ncp = _round_up(num_classes, 128)

    # Large S-tiles (multiple of 16 for bf16 sublane packing).
    tile_s = max(16, _round_up(tile_s, 16))
    tile = min(tile_s, _round_up(pl.cdiv(s, n_split), 16))
    rows_per_split = pl.cdiv(pl.cdiv(s, n_split), tile) * tile
    s_pad_total = n_split * rows_per_split

    patches = jnp.pad(patches, ((0, 0), (0, s_pad_total - s), (0, k_pad - k)))

    # Fold BN scale into the conv weights (wrapper-side, done once).
    # w1 goes to bf16 (MXU); w2/wfc stay f32 for accuracy (cheap 128x128 dots).
    w1s = _pad_mat(params["w1"] * params["s1"][None, :], k_pad, c1p, jnp.bfloat16)
    b1 = _pad_vec(params["b1"], c1p, jnp.float32)
    w2s = _pad_mat(params["w2"] * params["s2"][None, :], c1p, c2p, jnp.float32)
    b2 = _pad_vec(params["b2"], c2p, jnp.float32)
    wfc = _pad_mat(params["wfc"], c2p, ncp, jnp.float32)
    bfc = _pad_vec(params["bfc"], ncp, jnp.float32)

    partial = fused_i3d_head(patches, w1s, b1, w2s, b2, wfc, bfc,
                             s_valid=s, tile_rows=tile, n_split=n_split)
    logits = partial.sum(axis=0)                 # combine per-split partials
    return logits[:, 0, :num_classes]


# Pure-JAX reference (f32) for a correctness sanity check.
def i3d_reference(x_ncdhw, params):
    x = jnp.transpose(x_ncdhw, (0, 2, 3, 4, 1)).astype(jnp.float32)
    patches, _ = im2col_3d(x, (3, 3, 3), (1, 2, 2), (1, 1, 1))   # (n, s, k) f32
    h1 = jnp.maximum(patches @ (params["w1"] * params["s1"][None, :])
                     + params["b1"], 0.0)
    h2 = jnp.maximum(h1 @ (params["w2"] * params["s2"][None, :])
                     + params["b2"], 0.0)
    pooled = h2.mean(axis=1)
    return pooled @ params["wfc"] + params["bfc"]


# -----------------------------------------------------------------------------
if __name__ == "__main__":
    num_classes = 7
    # Small NCDHW video clip; 18x18 spatial makes S=648 (not a tile multiple)
    # so the analytic padded-row correction path is exercised.
    batch, c_in, t, h, w = 2, 3, 8, 18, 18

    params = make_params(num_classes, c_in=c_in)
    x = jax.random.normal(jax.random.PRNGKey(0), (batch, c_in, t, h, w),
                          dtype=jnp.float32)

    fwd = jax.jit(lambda xx: i3d_forward(xx, params, tile_s=4096))
    logits = jax.block_until_ready(fwd(x))

    assert logits.shape == (batch, num_classes)
    assert bool(jnp.all(jnp.isfinite(logits)))

    ref = i3d_reference(x, params)
    assert bool(jnp.allclose(logits, ref, atol=5e-2, rtol=5e-2)), (logits, ref)

    print("KERNEL_OK")
</pallas_src>

<mosaic_0001>
module attributes {stable_mosaic.version = 11 : i64} {
  func.func @_fused_i3d_kernel(%arg0: i32, %arg1: i32, %arg2: i32, %arg3: memref<1x656x128xbf16, #tpu.memory_space<vmem>>, %arg4: memref<128x128xbf16, #tpu.memory_space<vmem>>, %arg5: memref<1x128xf32, #tpu.memory_space<vmem>>, %arg6: memref<128x128xf32, #tpu.memory_space<vmem>>, %arg7: memref<1x128xf32, #tpu.memory_space<vmem>>, %arg8: memref<128x128xf32, #tpu.memory_space<vmem>>, %arg9: memref<1x128xf32, #tpu.memory_space<vmem>>, %arg10: memref<1x1x8x128xf32, #tpu.memory_space<vmem>>, %arg11: memref<8x128xf32, #tpu.memory_space<vmem>>) attributes {dimension_semantics = [#tpu.dimension_semantics<parallel>, #tpu.dimension_semantics<parallel>, #tpu.dimension_semantics<arbitrary>], iteration_bounds = array<i64: 1, 2, 1>, scalar_prefetch = 0 : i64, scratch_operands = 1 : i64, tpu.core_type = #tpu.core_type<tc>, window_params = [{transform_indices = @transform_0, window_bounds = array<i64: 1, 656, 128>}, {pipeline_mode = #tpu.pipeline_mode<synchronous>, transform_indices = @transform_1, window_bounds = array<i64: 128, 128>}, {pipeline_mode = #tpu.pipeline_mode<synchronous>, transform_indices = @transform_2, window_bounds = array<i64: 1, 128>}, {pipeline_mode = #tpu.pipeline_mode<synchronous>, transform_indices = @transform_3, window_bounds = array<i64: 128, 128>}, {pipeline_mode = #tpu.pipeline_mode<synchronous>, transform_indices = @transform_4, window_bounds = array<i64: 1, 128>}, {pipeline_mode = #tpu.pipeline_mode<synchronous>, transform_indices = @transform_5, window_bounds = array<i64: 128, 128>}, {pipeline_mode = #tpu.pipeline_mode<synchronous>, transform_indices = @transform_6, window_bounds = array<i64: 1, 128>}, {transform_indices = @transform_7, window_bounds = array<i64: 1, 1, 8, 128>}]} {
    %c0_i32 = arith.constant 0 : i32
    %0 = arith.cmpi eq, %arg2, %c0_i32 : i32
    %1 = arith.extui %0 : i1 to i32
    %c0_i32_0 = arith.constant 0 : i32
    %2 = arith.cmpi ne, %1, %c0_i32_0 : i32
    scf.if %2 {
      %cst_21 = arith.constant 0.000000e+00 : f32
      %27 = vector.broadcast %cst_21 : f32 to vector<8x128xf32>
      %c0_22 = arith.constant 0 : index
      %c0_23 = arith.constant 0 : index
      %28 = vector.load %arg11[%c0_22, %c0_23] : memref<8x128xf32, #tpu.memory_space<vmem>>, vector<8x128xf32>
      tpu.vector_store %arg11[%c0_22, %c0_23], %27 {strides = array<i32>} : memref<8x128xf32, #tpu.memory_space<vmem>>, vector<8x128xf32>,
    } else {
    }
    %c0 = arith.constant 0 : index
    %c0_1 = arith.constant 0 : index
    %c0_2 = arith.constant 0 : index
    %3 = vector.load %arg3[%c0, %c0_1, %c0_2] : memref<1x656x128xbf16, #tpu.memory_space<vmem>>, vector<1x656x128xbf16>
    %4 = vector.shape_cast %3 : vector<1x656x128xbf16> to vector<656x128xbf16>
    %c0_3 = arith.constant 0 : index
    %c0_4 = arith.constant 0 : index
    %5 = vector.load %arg4[%c0_3, %c0_4] : memref<128x128xbf16, #tpu.memory_space<vmem>>, vector<128x128xbf16>
    %cst = arith.constant dense<0.000000e+00> : vector<656x128xf32>
    %6 = tpu.matmul %4, %5, %cst {dimension_numbers = #tpu.dot_dimension_numbers<[1], [0], [0], [1], [0, 0, 1, 1], [], []>} : vector<656x128xbf16>, vector<128x128xbf16>, vector<656x128xf32> -> vector<656x128xf32>
    %c0_5 = arith.constant 0 : index
    %c0_6 = arith.constant 0 : index
    %7 = vector.load %arg5[%c0_5, %c0_6] : memref<1x128xf32, #tpu.memory_space<vmem>>, vector<1x128xf32>
    %8 = vector.broadcast %7 : vector<1x128xf32> to vector<656x128xf32>
    %9 = arith.addf %6, %8 : vector<656x128xf32>
    %cst_7 = arith.constant 0.000000e+00 : f32
    %10 = vector.broadcast %cst_7 : f32 to vector<656x128xf32>
    %11 = arith.maximumf %9, %10 : vector<656x128xf32>
    %c0_8 = arith.constant 0 : index
    %c0_9 = arith.constant 0 : index
    %12 = vector.load %arg6[%c0_8, %c0_9] : memref<128x128xf32, #tpu.memory_space<vmem>>, vector<128x128xf32>
    %cst_10 = arith.constant dense<0.000000e+00> : vector<656x128xf32>
    %13 = tpu.matmul %11, %12, %cst_10 {dimension_numbers = #tpu.dot_dimension_numbers<[1], [0], [0], [1], [0, 0, 1, 1], [], []>} : vector<656x128xf32>, vector<128x128xf32>, vector<656x128xf32> -> vector<656x128xf32>
    %c0_11 = arith.constant 0 : index
    %c0_12 = arith.constant 0 : index
    %14 = vector.load %arg7[%c0_11, %c0_12] : memref<1x128xf32, #tpu.memory_space<vmem>>, vector<1x128xf32>
    %15 = vector.broadcast %14 : vector<1x128xf32> to vector<656x128xf32>
    %16 = arith.addf %13, %15 : vector<656x128xf32>
    %cst_13 = arith.constant 0.000000e+00 : f32
    %17 = vector.broadcast %cst_13 : f32 to vector<656x128xf32>
    %18 = arith.maximumf %16, %17 : vector<656x128xf32>
    %c0_14 = arith.constant 0 : index
    %c0_15 = arith.constant 0 : index
    %19 = vector.load %arg11[%c0_14, %c0_15] : memref<8x128xf32, #tpu.memory_space<vmem>>, vector<8x128xf32>
    %20 = vector.shape_cast %18 : vector<656x128xf32> to vector<82x8x128xf32>
    %cst_16 = arith.constant dense<0.000000e+00> : vector<8x128xf32>
    %21 = vector.multi_reduction <add>, %20, %cst_16 [0] : vector<82x8x128xf32> to vector<8x128xf32>
    %22 = arith.addf %19, %21 : vector<8x128xf32>
    %c0_17 = arith.constant 0 : index
    %c0_18 = arith.constant 0 : index
    %23 = vector.load %arg11[%c0_17, %c0_18] : memref<8x128xf32, #tpu.memory_space<vmem>>, vector<8x128xf32>
    tpu.vector_store %arg11[%c0_17, %c0_18], %22 {strides = array<i32>} : memref<8x128xf32, #tpu.memory_space<vmem>>, vector<8x128xf32>,
    %c0_i32_19 = arith.constant 0 : i32
    %24 = arith.cmpi eq, %arg2, %c0_i32_19 : i32
    %25 = arith.extui %24 : i1 to i32
    %c0_i32_20 = arith.constant 0 : i32
    %26 = arith.cmpi ne, %25, %c0_i32_20 : i32
    scf.if %26 {
      %c0_21 = arith.constant 0 : index
      %c0_22 = arith.constant 0 : index
      %27 = vector.load %arg11[%c0_21, %c0_22] : memref<8x128xf32, #tpu.memory_space<vmem>>, vector<8x128xf32>
      %cst_23 = arith.constant dense<0.000000e+00> : vector<128xf32>
      %28 = vector.multi_reduction <add>, %27, %cst_23 [0] : vector<8x128xf32> to vector<128xf32>
      %29 = vector.shape_cast %28 : vector<128xf32> to vector<1x128xf32>
      %c0_24 = arith.constant 0 : index
      %c0_25 = arith.constant 0 : index
      %30 = vector.load %arg5[%c0_24, %c0_25] : memref<1x128xf32, #tpu.memory_space<vmem>>, vector<1x128xf32>
      %cst_26 = arith.constant 0.000000e+00 : f32
      %31 = vector.broadcast %cst_26 : f32 to vector<1x128xf32>
      %32 = arith.maximumf %30, %31 : vector<1x128xf32>
      %c0_27 = arith.constant 0 : index
      %c0_28 = arith.constant 0 : index
      %33 = vector.load %arg6[%c0_27, %c0_28] : memref<128x128xf32, #tpu.memory_space<vmem>>, vector<128x128xf32>
      %cst_29 = arith.constant dense<0.000000e+00> : vector<1x128xf32>
      %34 = tpu.matmul %32, %33, %cst_29 {dimension_numbers = #tpu.dot_dimension_numbers<[1], [0], [0], [1], [0, 0, 1, 1], [], []>} : vector<1x128xf32>, vector<128x128xf32>, vector<1x128xf32> -> vector<1x128xf32>
      %c0_30 = arith.constant 0 : index
      %c0_31 = arith.constant 0 : index
      %35 = vector.load %arg7[%c0_30, %c0_31] : memref<1x128xf32, #tpu.memory_space<vmem>>, vector<1x128xf32>
      %36 = arith.addf %34, %35 : vector<1x128xf32>
      %cst_32 = arith.constant 0.000000e+00 : f32
      %37 = vector.broadcast %cst_32 : f32 to vector<1x128xf32>
      %38 = arith.maximumf %36, %37 : vector<1x128xf32>
      %c1_i32 = arith.constant 1 : i32
      %39 = arith.addi %arg0, %c1_i32 : i32
      %c656_i32 = arith.constant 656 : i32
      %40 = arith.muli %39, %c656_i32 : i32
      %c648_i32 = arith.constant 648 : i32
      %41 = arith.subi %40, %c648_i32 : i32
      %c0_i32_33 = arith.constant 0 : i32
      %c656_i32_34 = arith.constant 656 : i32
      %42 = arith.maxsi %c0_i32_33, %41 : i32
      %43 = arith.minsi %c656_i32_34, %42 : i32
      %44 = arith.sitofp %43 : i32 to f32
      %45 = vector.broadcast %44 : f32 to vector<1x128xf32>
      %46 = arith.mulf %45, %38 : vector<1x128xf32>
      %47 = arith.subf %29, %46 : vector<1x128xf32>
      %cst_35 = arith.constant 0.00154320989 : f32
      %48 = vector.broadcast %cst_35 : f32 to vector<1x128xf32>
      %49 = arith.mulf %47, %48 : vector<1x128xf32>
      %c0_36 = arith.constant 0 : index
      %c0_37 = arith.constant 0 : index
      %50 = vector.load %arg9[%c0_36, %c0_37] : memref<1x128xf32, #tpu.memory_space<vmem>>, vector<1x128xf32>
      %c0_i32_38 = arith.constant 0 : i32
      %51 = arith.cmpi eq, %arg0, %c0_i32_38 : i32
      %52 = arith.extui %51 : i1 to i32
      %53 = arith.sitofp %52 : i32 to f32
      %54 = vector.broadcast %53 : f32 to vector<1x128xf32>
      %55 = arith.mulf %50, %54 : vector<1x128xf32>
      %c0_39 = arith.constant 0 : index
      %c0_40 = arith.constant 0 : index
      %56 = vector.load %arg8[%c0_39, %c0_40] : memref<128x128xf32, #tpu.memory_space<vmem>>, vector<128x128xf32>
      %cst_41 = arith.constant dense<0.000000e+00> : vector<1x128xf32>
      %57 = tpu.matmul %49, %56, %cst_41 {dimension_numbers = #tpu.dot_dimension_numbers<[1], [0], [0], [1], [0, 0, 1, 1], [], []>} : vector<1x128xf32>, vector<128x128xf32>, vector<1x128xf32> -> vector<1x128xf32>
      %58 = arith.addf %57, %55 : vector<1x128xf32>
      %59 = vector.shape_cast %58 : vector<1x128xf32> to vector<1x1x1x128xf32>
      %60 = vector.shape_cast %59 : vector<1x1x1x128xf32> to vector<1x1x1x128xf32>
      %61 = vector.broadcast %60 : vector<1x1x1x128xf32> to vector<1x1x8x128xf32>
      %c0_42 = arith.constant 0 : index
      %c0_43 = arith.constant 0 : index
      %c0_44 = arith.constant 0 : index
      %c0_45 = arith.constant 0 : index
      %62 = vector.load %arg10[%c0_42, %c0_43, %c0_44, %c0_45] : memref<1x1x8x128xf32, #tpu.memory_space<vmem>>, vector<1x1x8x128xf32>
      tpu.vector_store %arg10[%c0_42, %c0_43, %c0_44, %c0_45], %61 {strides = array<i32>} : memref<1x1x8x128xf32, #tpu.memory_space<vmem>>, vector<1x1x8x128xf32>,
    } else {
    }
    return
  }
  func.func @transform_0(%arg0: i32, %arg1: i32, %arg2: i32) -> (i32, i32, i32) {
    %c1_i32 = arith.constant 1 : i32
    %0 = arith.muli %arg0, %c1_i32 : i32
    %1 = arith.addi %0, %arg2 : i32
    %c0_i32 = arith.constant 0 : i32
    %c0_i32_0 = arith.constant 0 : i32
    return %arg1, %1, %c0_i32 : i32, i32, i32
  }
  func.func @transform_1(%arg0: i32, %arg1: i32, %arg2: i32) -> (i32, i32) {
    %c0_i32 = arith.constant 0 : i32
    %c0_i32_0 = arith.constant 0 : i32
    %c0_i32_1 = arith.constant 0 : i32
    return %c0_i32, %c0_i32_0 : i32, i32
  }
  func.func @transform_2(%arg0: i32, %arg1: i32, %arg2: i32) -> (i32, i32) {
    %c0_i32 = arith.constant 0 : i32
    %c0_i32_0 = arith.constant 0 : i32
    %c0_i32_1 = arith.constant 0 : i32
    return %c0_i32, %c0_i32_0 : i32, i32
  }
  func.func @transform_3(%arg0: i32, %arg1: i32, %arg2: i32) -> (i32, i32) {
    %c0_i32 = arith.constant 0 : i32
    %c0_i32_0 = arith.constant 0 : i32
    %c0_i32_1 = arith.constant 0 : i32
    return %c0_i32, %c0_i32_0 : i32, i32
  }
  func.func @transform_4(%arg0: i32, %arg1: i32, %arg2: i32) -> (i32, i32) {
    %c0_i32 = arith.constant 0 : i32
    %c0_i32_0 = arith.constant 0 : i32
    %c0_i32_1 = arith.constant 0 : i32
    return %c0_i32, %c0_i32_0 : i32, i32
  }
  func.func @transform_5(%arg0: i32, %arg1: i32, %arg2: i32) -> (i32, i32) {
    %c0_i32 = arith.constant 0 : i32
    %c0_i32_0 = arith.constant 0 : i32
    %c0_i32_1 = arith.constant 0 : i32
    return %c0_i32, %c0_i32_0 : i32, i32
  }
  func.func @transform_6(%arg0: i32, %arg1: i32, %arg2: i32) -> (i32, i32) {
    %c0_i32 = arith.constant 0 : i32
    %c0_i32_0 = arith.constant 0 : i32
    %c0_i32_1 = arith.constant 0 : i32
    return %c0_i32, %c0_i32_0 : i32, i32
  }
  func.func @transform_7(%arg0: i32, %arg1: i32, %arg2: i32) -> (i32, i32, i32, i32) {
    %c0_i32 = arith.constant 0 : i32
    %c0_i32_0 = arith.constant 0 : i32
    %c0_i32_1 = arith.constant 0 : i32
    return %arg0, %arg1, %c0_i32, %c0_i32_0 : i32, i32, i32, i32
  }
}

</mosaic_0001>

<bundles_post_ra>
// kernel: _lambda_.1
= control target key start
LH: loop header
LB: loop body
LE: loop exit
PB: predicated region body
PF: predicated region fallthrough
CT: control target
= control target key end

     0   :  { %s3023_s24 = smov 0   ;;  %s3025_s25 = smov 0   ;;  %s3616_s0 = inlined_call_operand.vmem [shape: bf16[2,656,128], index: 0, kind: input, shape index: {}]   ;;  %s3617_s1 = inlined_call_operand.vmem [shape: bf16[128,128], index: 1, kind: input, shape index: {}]   ;;  %s3618_s2 = inlined_call_operand.vmem [shape: f32[1,128], index: 2, kind: input, shape index: {}]   ;;  %s3619_s3 = inlined_call_operand.vmem [shape: f32[128,128], index: 3, kind: input, shape index: {}]   ;;  %s3620_s4 = inlined_call_operand.vmem [shape: f32[1,128], index: 4, kind: input, shape index: {}]   ;;  %s3621_s5 = inlined_call_operand.vmem [shape: f32[128,128], index: 5, kind: input, shape index: {}]   ;;  %s3622_s6 = inlined_call_operand.vmem [shape: f32[1,128], index: 6, kind: input, shape index: {}]   ;;  %s3623_s7 = inlined_call_operand.vmem [shape: f32[1,2,8,128], index: 7, kind: output, shape index: {}]  }
   0x1   :  { %s3027_s26 = smov 0  }
   0x2 LB: > { %s32_s27 = sadd.s32 1, %s2974_s25  ;;  %p2140_p0 = scmp.ge.s32.totalorder %s2978_s26, 1  ;;  %s2978_s26 = sphi %s3027_s26, %s17_s26   ;;  %s2974_s25 = sphi %s3025_s25, %s3625_s25   ;;  %s2970_s24 = sphi %s3023_s24, %s3624_s24  }
   0x3   : > { %p34_p1 = scmp.ge.s32.totalorder %s32_s27, 2  ;;  %p269_p2 = scmp.lt.s32.totalorder %s2978_s26, 3 }
   0x5   : > { %s3627_s27 = smov (%p34_p1, %s32_s27), 0  ;;  %p270_p3 = pnand %p2140_p0, %p269_p2 }
   0x6   : > { %v2906_v0 = vld [vmem:[%s3617_s1] sm:$0xff] (!%p270_p3)   ;;  %v2980_v1 = vmov (!%p270_p3), 0.0   ;;  %v2907_v2 = vld [vmem:[%s3617_s1 + $0x8] sm:$0xff] (!%p270_p3)   ;;  %vm2981_vm0 = vmmov (!%p270_p3), 0   ;;  %p311_p4 = scmp.lt.s32.totalorder (!%p270_p3), %s2970_s24, 1  ;;  %v2908_v3 = vld [vmem:[%s3617_s1 + $0x10] sm:$0xff] (!%p270_p3)  }
   0x7   : > { %273 = sbr.rel (%p270_p3) target bundleno = 999 (0x3e7), region = 48  ;;  %2377 = vmatprep.subr.bf16.mxu0 (!%p270_p3), %v2980_v1  ;;  %2862 = vmatprep.subr.bf16.mxu1 (!%p270_p3), %v2980_v1  ;;  %v2909_v4 = vld [vmem:[%s3617_s1 + $0x18] sm:$0xff] (!%p270_p3)   ;;  %v2910_v5 = vld [vmem:[%s3617_s1 + $0x20] sm:$0xff] (!%p270_p3)   ;;  %v2911_v6 = vld [vmem:[%s3617_s1 + $0x28] sm:$0xff] (!%p270_p3)  }
   0x8   : > { %2378 = vmatpush3.bf16.msra.mxu0 (!%p270_p3), %v2906_v0  ;;  %2393 = vmatprep.mubr.msk.bf16.mxu0 (!%p270_p3), %vm2981_vm0, %v2980_v1  ;;  %v2912_v7 = vld [vmem:[%s3617_s1 + $0x30] sm:$0xff] (!%p270_p3)   ;;  %v2913_v8 = vld [vmem:[%s3617_s1 + $0x38] sm:$0xff] (!%p270_p3)   ;;  %v1177_v21 = vld [vmem:[%s3619_s3] sm:$0xff] (!%p270_p3) }
   0x9   : > { %2379 = vmatprep.subr.bf16.mxu0 (!%p270_p3), %v2980_v1  ;;  %2870 = vmatpush3.bf16.msra.mxu1 (!%p270_p3), %v2906_v0  ;;  %v1178_v22 = vld [vmem:[%s3619_s3 + $0x8] sm:$0xff] (!%p270_p3)  ;;  %v1179_v25 = vld [vmem:[%s3619_s3 + $0x10] sm:$0xff] (!%p270_p3)  ;;  %v1180_v26 = vld [vmem:[%s3619_s3 + $0x18] sm:$0xff] (!%p270_p3) }
   0xa   : > { %2863 = vmatprep.subr.bf16.mxu1 (!%p270_p3), %v2980_v1  ;;  %2525 = vmatprep.mubr.msk.bf16.mxu1 (!%p270_p3), %vm2981_vm0, %v2980_v1  ;;  %v3134_v24 = vpack.c.bf16 (!%p270_p3), %v1178_v22, %v1177_v21  ;;  %v3144_v27 = vpack.c.bf16 (!%p270_p3), %v1180_v26, %v1179_v25  ;;  %v1181_v29 = vld [vmem:[%s3619_s3 + $0x20] sm:$0xff] (!%p270_p3)  ;;  %v1182_v30 = vld [vmem:[%s3619_s3 + $0x28] sm:$0xff] (!%p270_p3)  ;;  %v1183_v33 = vld [vmem:[%s3619_s3 + $0x30] sm:$0xff] (!%p270_p3) }
   0xb   : > { %v3160_v32 = vpack.c.bf16 (!%p270_p3), %v1182_v30, %v1181_v29  ;;  %v1184_v34 = vld [vmem:[%s3619_s3 + $0x38] sm:$0xff] (!%p270_p3)  ;;  %v1185_v37 = vld [vmem:[%s3619_s3 + $0x40] sm:$0xff] (!%p270_p3)  ;;  %v1186_v38 = vld [vmem:[%s3619_s3 + $0x48] sm:$0xff] (!%p270_p3) }
   0xc   : > { %2380 = vmatpush3.bf16.msra.mxu0 (!%p270_p3), %v2907_v2  ;;  %v3170_v35 = vpack.c.bf16 (!%p270_p3), %v1184_v34, %v1183_v33  ;;  %v3186_v40 = vpack.c.bf16 (!%p270_p3), %v1186_v38, %v1185_v37  ;;  %v1187_v41 = vld [vmem:[%s3619_s3 + $0x50] sm:$0xff] (!%p270_p3)  ;;  %v1188_v42 = vld [vmem:[%s3619_s3 + $0x58] sm:$0xff] (!%p270_p3)  ;;  %v1189_v45 = vld [vmem:[%s3619_s3 + $0x60] sm:$0xff] (!%p270_p3) }
   0xd   : > { %2381 = vmatprep.subr.bf16.mxu0 (!%p270_p3), %v2980_v1  ;;  %2871 = vmatpush3.bf16.msra.mxu1 (!%p270_p3), %v2907_v2  ;;  %v3196_v43 = vpack.c.bf16 (!%p270_p3), %v1188_v42, %v1187_v41  ;;  %v1190_v46 = vld [vmem:[%s3619_s3 + $0x68] sm:$0xff] (!%p270_p3)  ;;  %v1191_v49 = vld [vmem:[%s3619_s3 + $0x70] sm:$0xff] (!%p270_p3)  ;;  %v1192_v50 = vld [vmem:[%s3619_s3 + $0x78] sm:$0xff] (!%p270_p3) }
   0xe   : > { %s3629_s24 = smov (!%p311_p4, %s2970_s24), 1  ;;  %2864 = vmatprep.subr.bf16.mxu1 %v2980_v1  ;;  %v2806_v48 = vpack.c.bf16 %v1190_v46, %v1189_v45  ;;  %v2810_v52 = vpack.c.bf16 %v1192_v50, %v1191_v49 }
   0xf   : > { %s2878_s11 = smul.u32 328, %s3629_s24  ;;  %s2142_s16 = sshll.u32 %s3629_s24, 3 }
  0x10   : > { %2382 = vmatpush3.bf16.msra.mxu0 %v2908_v3  ;;  %s328_s19 = scalar_lea.vmem %s3623_s7, %s2142_s16 }
  0x11   : > { %s3065_s14 = scalar_lea.vmem %s3616_s0, %s2878_s11  ;;  %2383 = vmatprep.subr.bf16.mxu0 %v2980_v1  ;;  %2872 = vmatpush3.bf16.msra.mxu1 %v2908_v3 }
  0x12   : > { %2865 = vmatprep.subr.bf16.mxu1 %v2980_v1  ;;  %v2914_v9 = vld [vmem:[%s3065_s14] sm:$0xff]   ;;  %v2915_v10 = vld [vmem:[%s3065_s14 + $0x8] sm:$0xff]   ;;  %v2916_v11 = vld [vmem:[%s3065_s14 + $0x10] sm:$0xff]  }
  0x13   : > { %v2917_v12 = vld [vmem:[%s3065_s14 + $0x18] sm:$0xff]   ;;  %v2934_v13 = vld [vmem:[%s3065_s14 + $0x108] sm:$0xff]   ;;  %v2918_v14 = vld [vmem:[%s3065_s14 + $0x20] sm:$0xff]  }
  0x14   : > { %2384 = vmatpush3.bf16.msra.mxu0 %v2909_v4  ;;  %v2936_v15 = vld [vmem:[%s3065_s14 + $0x110] sm:$0xff]   ;;  %v2919_v16 = vld [vmem:[%s3065_s14 + $0x28] sm:$0xff]   ;;  %v2938_v17 = vld [vmem:[%s3065_s14 + $0x118] sm:$0xff]  }
  0x15   : > { %2385 = vmatprep.subr.bf16.mxu0 %v2980_v1  ;;  %2873 = vmatpush3.bf16.msra.mxu1 %v2909_v4  ;;  %v2920_v18 = vld [vmem:[%s3065_s14 + $0x30] sm:$0xff]   ;;  %v2940_v19 = vld [vmem:[%s3065_s14 + $0x120] sm:$0xff]   ;;  %v2921_v20 = vld [vmem:[%s3065_s14 + $0x38] sm:$0xff]  }
  0x16   : > { %2866 = vmatprep.subr.bf16.mxu1 %v2980_v1  ;;  %v2942_v23 = vld [vmem:[%s3065_s14 + $0x128] sm:$0xff]   ;;  %v2922_v28 = vld [vmem:[%s3065_s14 + $0x40] sm:$0xff]   ;;  %v2944_v31 = vld [vmem:[%s3065_s14 + $0x130] sm:$0xff]  }
  0x17   : > { %v2923_v36 = vld [vmem:[%s3065_s14 + $0x48] sm:$0xff]   ;;  %v2946_v39 = vld [vmem:[%s3065_s14 + $0x138] sm:$0xff]   ;;  %v2924_v44 = vld [vmem:[%s3065_s14 + $0x50] sm:$0xff]  }
  0x18   : > { %2386 = vmatpush3.bf16.msra.mxu0 %v2910_v5  ;;  %v2948_v47 = vld [vmem:[%s3065_s14 + $0x140] sm:$0xff]   ;;  %v2925_v51 = vld [vmem:[%s3065_s14 + $0x58] sm:$0xff]   ;;  %v2927_v54 = vld [vmem:[%s3065_s14 + $0x68] sm:$0xff]  }
  0x19   : > { %2387 = vmatprep.subr.bf16.mxu0 %v2980_v1  ;;  %2874 = vmatpush3.bf16.msra.mxu1 %v2910_v5  ;;  %v2926_v53 = vld [vmem:[%s3065_s14 + $0x60] sm:$0xff]   ;;  %v2928_v55 = vld [vmem:[%s3065_s14 + $0x70] sm:$0xff]   ;;  %v2929_v56 = vld [vmem:[%s3065_s14 + $0x78] sm:$0xff]  }
  0x1a   : > { %2867 = vmatprep.subr.bf16.mxu1 %v2980_v1  ;;  %v2930_v57 = vld [vmem:[%s3065_s14 + $0x80] sm:$0xff]   ;;  %v2931_v58 = vld [vmem:[%s3065_s14 + $0x88] sm:$0xff]   ;;  %v2932_v59 = vld [vmem:[%s3065_s14 + $0x90] sm:$0xff]  }
  0x1b   : > { %v2933_v60 = vld [vmem:[%s3065_s14 + $0x98] sm:$0xff]   ;;  %v2935_v61 = vld [vmem:[%s3065_s14 + $0xa0] sm:$0xff]   ;;  %v2937_v62 = vld [vmem:[%s3065_s14 + $0xa8] sm:$0xff]  }
  0x1c   : > { %2388 = vmatpush3.bf16.msra.mxu0 %v2911_v6  ;;  %v2939_v63 = vld [vmem:[%s3065_s14 + $0xb0] sm:$0xff]   ;;  %v2941_v0 = vld [vmem:[%s3065_s14 + $0xb8] sm:$0xff]   ;;  %v2943_v2 = vld [vmem:[%s3065_s14 + $0xc0] sm:$0xff]  }
  0x1d   : > { %2389 = vmatprep.subr.bf16.mxu0 %v2980_v1  ;;  %2875 = vmatpush3.bf16.msra.mxu1 %v2911_v6  ;;  %v2945_v3 = vld [vmem:[%s3065_s14 + $0xc8] sm:$0xff]   ;;  %v2947_v4 = vld [vmem:[%s3065_s14 + $0xd0] sm:$0xff]   ;;  %v3269_v5 = vld [vmem:[%s3618_s2] ss:$0 sm:$0xff] }
  0x1e   : > { %2868 = vmatprep.subr.bf16.mxu1 %v2980_v1  ;;  %v2951_v29 = vld [vmem:[%s3065_s14 + $0xe8] sm:$0xff]   ;;  %v2952_v42 = vld [vmem:[%s3065_s14 + $0xf0] sm:$0xff]   ;;  %v2953_v50 = vld [vmem:[%s3065_s14 + $0xf8] sm:$0xff]  }
  0x20   : > { %2390 = vmatpush3.bf16.msra.mxu0 %v2912_v7 }
  0x21   : > { %2391 = vmatprep.subr.bf16.mxu0 %v2980_v1  ;;  %2876 = vmatpush3.bf16.msra.mxu1 %v2912_v7 }
  0x22   : > { %2869 = vmatprep.subr.bf16.mxu1 %v2980_v1 }
  0x24   : > { %2392 = vmatpush3.bf16.msra.mxu0 %v2913_v8 }
  0x25   : > { %2877 = vmatpush3.bf16.msra.mxu1 %v2913_v8 }
  0x26   : > { %2783 = vmatprep.subr.bf16.mxu1 %v3134_v24 }
  0x27   : > { %2394 = vmatmul.mubr.bf16.vlgmr.msra.gmra.mrb[0].mxu0 %v2914_v9  ;;  %v2949_v9 = vld [vmem:[%s3065_s14 + $0xd8] sm:$0xff]  }
  0x28   : > { %2397 = vmatprep.mubr.msk.bf16.mxu0 %vm2981_vm0, %v2980_v1  ;;  %2526 = vmatmul.mubr.bf16.vlgmr.msra.gmra.mrb[0].mxu1 %v2934_v13 }
  0x29   : > { %2529 = vmatprep.mubr.msk.bf16.mxu1 %vm2981_vm0, %v2980_v1  ;;  %2785 = vmatpush3.bf16.msra.mxu1 %v3134_v24 }
  0x2a   : > { %2787 = vmatprep.subr.bf16.mxu1 %v3144_v27 }
  0x2d   : > { %2789 = vmatpush3.bf16.msra.mxu1 %v3144_v27 }
  0x2e   : > { %2791 = vmatprep.subr.bf16.mxu1 %v3160_v32 }
  0x2f   : > { %2398 = vmatmul.mubr.bf16.gmra.mrb[4].mxu0 %v2915_v10 }
  0x30   : > { %2401 = vmatprep.mubr.msk.bf16.mxu0 %vm2981_vm0, %v2980_v1  ;;  %2530 = vmatmul.mubr.bf16.gmra.mrb[4].mxu1 %v2936_v15 }
  0x31   : > { %2533 = vmatprep.mubr.msk.bf16.mxu1 %vm2981_vm0, %v2980_v1  ;;  %2793 = vmatpush3.bf16.msra.mxu1 %v3160_v32 }
  0x32   : > { %2795 = vmatprep.subr.bf16.mxu1 %v3170_v35 }
  0x35   : > { %2797 = vmatpush3.bf16.msra.mxu1 %v3170_v35 }
  0x36   : > { %2799 = vmatprep.subr.bf16.mxu1 %v3186_v40 }
  0x37   : > { %2402 = vmatmul.mubr.bf16.gmra.mrb[8].mxu0 %v2916_v11 }
  0x38   : > { %2405 = vmatprep.mubr.msk.bf16.mxu0 %vm2981_vm0, %v2980_v1  ;;  %2534 = vmatmul.mubr.bf16.gmra.mrb[8].mxu1 %v2938_v17 }
  0x39   : > { %2537 = vmatprep.mubr.msk.bf16.mxu1 %vm2981_vm0, %v2980_v1  ;;  %2801 = vmatpush3.bf16.msra.mxu1 %v3186_v40 }
  0x3a   : > { %2803 = vmatprep.subr.bf16.mxu1 %v3196_v43 }
  0x3d   : > { %2805 = vmatpush3.bf16.msra.mxu1 %v3196_v43 }
  0x3e   : > { %2807 = vmatprep.subr.bf16.mxu1 %v2806_v48 }
  0x3f   : > { %2406 = vmatmul.mubr.bf16.gmra.mrb[12].mxu0 %v2917_v12 }
  0x40   : > { %2409 = vmatprep.mubr.msk.bf16.mxu0 %vm2981_vm0, %v2980_v1  ;;  %2538 = vmatmul.mubr.bf16.gmra.mrb[12].mxu1 %v2940_v19 }
  0x41   : > { %2541 = vmatprep.mubr.msk.bf16.mxu1 %vm2981_vm0, %v2980_v1  ;;  %2809 = vmatpush3.bf16.msra.mxu1 %v2806_v48 }
  0x42   : > { %2811 = vmatprep.subr.bf16.mxu1 %v2810_v52 }
  0x45   : > { %2813 = vmatpush3.bf16.msra.mxu1 %v2810_v52 }
  0x47   : > { %2410 = vmatmul.mubr.bf16.gmra.mrb[16].mxu0 %v2918_v14 }
  0x48   : > { %2413 = vmatprep.mubr.msk.bf16.mxu0 %vm2981_vm0, %v2980_v1  ;;  %2542 = vmatmul.mubr.bf16.gmra.mrb[16].mxu1 %v2942_v23 }
  0x49   : > { %2545 = vmatprep.mubr.msk.bf16.mxu1 %vm2981_vm0, %v2980_v1 }
  0x4f   : > { %2414 = vmatmul.mubr.bf16.gmra.mrb[20].mxu0 %v2919_v16 }
  0x50   : > { %2417 = vmatprep.mubr.msk.bf16.mxu0 %vm2981_vm0, %v2980_v1  ;;  %2546 = vmatmul.mubr.bf16.gmra.mrb[20].mxu1 %v2944_v31 }
  0x51   : > { %2549 = vmatprep.mubr.msk.bf16.mxu1 %vm2981_vm0, %v2980_v1 }
  0x57   : > { %2418 = vmatmul.mubr.bf16.gmra.mrb[24].mxu0 %v2920_v18  ;;  %v2950_v18 = vld [vmem:[%s3065_s14 + $0xe0] sm:$0xff]  }
  0x58   : > { %2421 = vmatprep.mubr.msk.bf16.mxu0 %vm2981_vm0, %v2980_v1  ;;  %2550 = vmatmul.mubr.bf16.gmra.mrb[24].mxu1 %v2946_v39 }
  0x59   : > { %2553 = vmatprep.mubr.msk.bf16.mxu1 %vm2981_vm0, %v2980_v1 }
  0x5f   : > { %2422 = vmatmul.mubr.bf16.gmra.mrb[28].mxu0 %v2921_v20 }
  0x60   : > { %2425 = vmatprep.mubr.msk.bf16.mxu0 %vm2981_vm0, %v2980_v1  ;;  %2554 = vmatmul.mubr.bf16.gmra.mrb[28].mxu1 %v2948_v47 }
  0x67   : > { %2426 = vmatmul.mubr.bf16.gmra.mrb[32].mxu0 %v2922_v28 }
  0x68   : > { %2429 = vmatprep.mubr.msk.bf16.mxu0 %vm2981_vm0, %v2980_v1 }
  0x6f   : > { %2430 = vmatmul.mubr.bf16.gmra.mrb[36].mxu0 %v2923_v36  ;;  %v2982_v36 = vmov 0.0|0.0  }
  0x70   : > { %2433 = vmatprep.mubr.msk.bf16.mxu0 %vm2981_vm0, %v2980_v1  ;;  %2814 = vmatprep.subr.bf16.mxu1 %v2982_v36 }
  0x77   : > { %2434 = vmatmul.mubr.bf16.gmra.mrb[40].mxu0 %v2924_v44 }
  0x78   : > { %2437 = vmatprep.mubr.msk.bf16.mxu0 %vm2981_vm0, %v2980_v1 }
  0x7f   : > { %2438 = vmatmul.mubr.bf16.gmra.mrb[44].mxu0 %v2925_v51 }
  0x80   : > { %2441 = vmatprep.mubr.msk.bf16.mxu0 %vm2981_vm0, %v2980_v1 }
  0x87   : > { %2442 = vmatmul.mubr.bf16.gmra.mrb[48].mxu0 %v2926_v53 }
  0x88   : > { %2445 = vmatprep.mubr.msk.bf16.mxu0 %vm2981_vm0, %v2980_v1 }
  0x8f   : > { %2446 = vmatmul.mubr.bf16.gmra.mrb[52].mxu0 %v2927_v54 }
  0x90   : > { %2449 = vmatprep.mubr.msk.bf16.mxu0 %vm2981_vm0, %v2980_v1 }
  0x97   : > { %2450 = vmatmul.mubr.bf16.gmra.mrb[56].mxu0 %v2928_v55 }
  0x98   : > { %2453 = vmatprep.mubr.msk.bf16.mxu0 %vm2981_vm0, %v2980_v1 }
  0x9f   : > { %2454 = vmatmul.mubr.bf16.gmra.mrb[60].mxu0 %v2929_v56 }
  0xa0   : > { %2457 = vmatprep.mubr.msk.bf16.mxu0 %vm2981_vm0, %v2980_v1 }
  0xa7   : > { %2458 = vmatmul.mubr.bf16.gmra.mrb[64].mxu0 %v2930_v57  ;;  %v2954_v57 = vld [vmem:[%s3065_s14 + $0x100] sm:$0xff]  }
  0xa8   : > { %2461 = vmatprep.mubr.msk.bf16.mxu0 %vm2981_vm0, %v2980_v1 }
  0xaf   : > { %2462 = vmatmul.mubr.bf16.gmra.mrb[68].mxu0 %v2931_v58 }
  0xb0   : > { %2465 = vmatprep.mubr.msk.bf16.mxu0 %vm2981_vm0, %v2980_v1 }
  0xb7   : > { %2466 = vmatmul.mubr.bf16.gmra.mrb[72].mxu0 %v2932_v59 }
  0xb8   : > { %2469 = vmatprep.mubr.msk.bf16.mxu0 %vm2981_vm0, %v2980_v1 }
  0xbf   : > { %2470 = vmatmul.mubr.bf16.gmra.mrb[76].mxu0 %v2933_v60 }
  0xc0   : > { %2473 = vmatprep.mubr.msk.bf16.mxu0 %vm2981_vm0, %v2980_v1 }
  0xc7   : > { %2474 = vmatmul.mubr.bf16.gmra.mrb[80].mxu0 %v2935_v61 }
  0xc8   : > { %2477 = vmatprep.mubr.msk.bf16.mxu0 %vm2981_vm0, %v2980_v1 }
  0xcf   : > { %2478 = vmatmul.mubr.bf16.gmra.mrb[84].mxu0 %v2937_v62 }
  0xd0   : > { %2481 = vmatprep.mubr.msk.bf16.mxu0 %vm2981_vm0, %v2980_v1 }
  0xd7   : > { %2482 = vmatmul.mubr.bf16.gmra.mrb[88].mxu0 %v2939_v63 }
  0xd8   : > { %2485 = vmatprep.mubr.msk.bf16.mxu0 %vm2981_vm0, %v2980_v1 }
  0xdf   : > { %2486 = vmatmul.mubr.bf16.gmra.mrb[92].mxu0 %v2941_v0 }
  0xe0   : > { %2489 = vmatprep.mubr.msk.bf16.mxu0 %vm2981_vm0, %v2980_v1 }
  0xe7   : > { %2490 = vmatmul.mubr.bf16.gmra.mrb[96].mxu0 %v2943_v2 }
  0xe8   : > { %2493 = vmatprep.mubr.msk.bf16.mxu0 %vm2981_vm0, %v2980_v1 }
  0xef   : > { %2494 = vmatmul.mubr.bf16.gmra.mrb[100].mxu0 %v2945_v3 }
  0xf0   : > { %2497 = vmatprep.mubr.msk.bf16.mxu0 %vm2981_vm0, %v2980_v1 }
  0xf7   : > { %2498 = vmatmul.mubr.bf16.gmra.mrb[104].mxu0 %v2947_v4 }
  0xf8   : > { %2501 = vmatprep.mubr.msk.bf16.mxu0 %vm2981_vm0, %v2980_v1 }
  0xfa   : > { %v768_v6 = vpop.f32.mrb[0].mxu0 }
  0xfb   : > { %v769_v7 = vadd.f32 %v3269_v5, %v768_v6  ;;  %v2395_v8 = vpop.f32.mrb[1].mxu0 }
  0xfc   : > { %v771_v10 = vpop.f32.mrb[2].mxu0 }
  0xfd   : > { %v1095_v11 = vmax.f32 %v769_v7, 0.0  ;;  %v772_v12 = vadd.f32 %v3269_v5, %v771_v10  ;;  %v2396_v13 = vpop.f32.mrb[3].mxu0 }
  0xff   : > { %v1096_v14 = vmax.f32 %v772_v12, 0.0  ;;  %2502 = vmatmul.mubr.bf16.gmra.mrb[108].mxu0 %v2949_v9  ;;  %2589 = vmatprep.mubr.f32.mxu1 %v1095_v11  ;;  %v3317_v11 = vpop.f32.mrb[0].mxu1 }
 0x100   : > { %2505 = vmatprep.mubr.msk.bf16.mxu0 %vm2981_vm0, %v2980_v1 }
 0x101   : > { %2590 = vmatmul.mubr.f32.vlgmr.msra.gmra.mrb[32].mxu1 %v1096_v14 }
 0x102   : > { %v776_v15 = vpop.f32.mrb[4].mxu0  ;;  %2816 = vmatpush3.bf16.msra.mxu1 %v3134_v24 }
 0x103   : > { %v777_v16 = vadd.f32 %v3269_v5, %v776_v15  ;;  %v2399_v17 = vpop.f32.mrb[5].mxu0  ;;  %2817 = vmatprep.subr.bf16.mxu1 %v2982_v36  ;;  %v2527_v15 = vpop.f32.mrb[1].mxu1 }
 0x104   : > { %v779_v19 = vpop.f32.mrb[6].mxu0 }
 0x105   : > { %v1097_v20 = vmax.f32 %v777_v16, 0.0  ;;  %v780_v21 = vadd.f32 %v3269_v5, %v779_v19  ;;  %v2400_v22 = vpop.f32.mrb[7].mxu0  ;;  %v3320_v16 = vpop.f32.mrb[2].mxu1 }
 0x106   : > { %2819 = vmatpush3.bf16.msra.mxu1 %v3144_v27 }
 0x107   : > { %v1098_v23 = vmax.f32 %v780_v21, 0.0  ;;  %2506 = vmatmul.mubr.bf16.gmra.mrb[112].mxu0 %v2950_v18  ;;  %2592 = vmatprep.mubr.f32.mxu1 %v1097_v20  ;;  %v2528_v18 = vpop.f32.mrb[3].mxu1 }
 0x108   : > { %2509 = vmatprep.mubr.msk.bf16.mxu0 %vm2981_vm0, %v2980_v1  ;;  %2820 = vmatprep.subr.bf16.mxu1 %v2982_v36  ;;  %v3322_v19 = vpop.f32.mrb[4].mxu1 }
 0x109   : > { %2593 = vmatmul.mubr.f32.gmra.mrb[34].mxu1 %v1098_v23  ;;  %v2531_v20 = vpop.f32.mrb[5].mxu1 }
 0x10a   : > { %v784_v25 = vpop.f32.mrb[8].mxu0  ;;  %2822 = vmatpush3.bf16.msra.mxu1 %v3160_v32  ;;  %v3324_v22 = vpop.f32.mrb[6].mxu1 }
 0x10b   : > { %v785_v26 = vadd.f32 %v3269_v5, %v784_v25  ;;  %v2403_v28 = vpop.f32.mrb[9].mxu0  ;;  %2823 = vmatprep.subr.bf16.mxu1 %v2982_v36 }
 0x10c   : > { %v787_v30 = vpop.f32.mrb[10].mxu0 }
 0x10d   : > { %v1099_v31 = vmax.f32 %v785_v26, 0.0  ;;  %v788_v33 = vadd.f32 %v3269_v5, %v787_v30  ;;  %v2404_v34 = vpop.f32.mrb[11].mxu0  ;;  %v2532_v26 = vpop.f32.mrb[7].mxu1 }
 0x10e   : > { %2825 = vmatpush3.bf16.msra.mxu1 %v3170_v35 }
 0x10f   : > { %v1100_v37 = vmax.f32 %v788_v33, 0.0  ;;  %2510 = vmatmul.mubr.bf16.gmra.mrb[116].mxu0 %v2951_v29  ;;  %2595 = vmatprep.mubr.f32.mxu1 %v1099_v31  ;;  %v3327_v29 = vpop.f32.mrb[8].mxu1 }
 0x110   : > { %2513 = vmatprep.mubr.msk.bf16.mxu0 %vm2981_vm0, %v2980_v1  ;;  %2826 = vmatprep.subr.bf16.mxu1 %v2982_v36  ;;  %v2535_v34 = vpop.f32.mrb[9].mxu1 }
 0x111   : > { %2596 = vmatmul.mubr.f32.gmra.mrb[36].mxu1 %v1100_v37  ;;  %v3330_v37 = vpop.f32.mrb[10].mxu1 }
 0x112   : > { %v792_v38 = vpop.f32.mrb[12].mxu0  ;;  %2828 = vmatpush3.bf16.msra.mxu1 %v3186_v40 }
 0x113   : > { %v793_v39 = vadd.f32 %v3269_v5, %v792_v38  ;;  %v2407_v41 = vpop.f32.mrb[13].mxu0  ;;  %2829 = vmatprep.subr.bf16.mxu1 %v2982_v36 }
 0x114   : > { %v795_v44 = vpop.f32.mrb[14].mxu0 }
 0x115   : > { %v1101_v45 = vmax.f32 %v793_v39, 0.0  ;;  %v796_v46 = vadd.f32 %v3269_v5, %v795_v44  ;;  %v2408_v47 = vpop.f32.mrb[15].mxu0  ;;  %v2536_v39 = vpop.f32.mrb[11].mxu1 }
 0x116   : > { %2831 = vmatpush3.bf16.msra.mxu1 %v3196_v43  ;;  %v3332_v41 = vpop.f32.mrb[12].mxu1 }
 0x117   : > { %v1102_v48 = vmax.f32 %v796_v46, 0.0  ;;  %2514 = vmatmul.mubr.bf16.gmra.mrb[120].mxu0 %v2952_v42  ;;  %2598 = vmatprep.mubr.f32.mxu1 %v1101_v45  ;;  %v2539_v42 = vpop.f32.mrb[13].mxu1 }
 0x118   : > { %2517 = vmatprep.mubr.msk.bf16.mxu0 %vm2981_vm0, %v2980_v1  ;;  %2832 = vmatprep.subr.bf16.mxu1 %v2982_v36  ;;  %v3334_v45 = vpop.f32.mrb[14].mxu1 }
 0x119   : > { %2599 = vmatmul.mubr.f32.gmra.mrb[38].mxu1 %v1102_v48  ;;  %v2540_v48 = vpop.f32.mrb[15].mxu1 }
 0x11a   : > { %v800_v24 = vpop.f32.mrb[16].mxu0 }
 0x11b   : > { %v801_v27 = vadd.f32 %v3269_v5, %v800_v24  ;;  %v2411_v49 = vpop.f32.mrb[17].mxu0 }
 0x11c   : > { %v803_v51 = vpop.f32.mrb[18].mxu0 }
 0x11d   : > { %v1103_v52 = vmax.f32 %v801_v27, 0.0  ;;  %v804_v53 = vadd.f32 %v3269_v5, %v803_v51  ;;  %v2412_v54 = vpop.f32.mrb[19].mxu0  ;;  %v3337_v27 = vpop.f32.mrb[16].mxu1 }
 0x11f   : > { %v1104_v55 = vmax.f32 %v804_v53, 0.0  ;;  %2518 = vmatmul.mubr.bf16.gmra.mrb[124].mxu0 %v2953_v50  ;;  %2601 = vmatprep.mubr.f32.mxu1 %v1103_v52  ;;  %v2543_v52 = vpop.f32.mrb[17].mxu1 }
 0x120   : > { %2521 = vmatprep.mubr.msk.bf16.mxu0 %vm2981_vm0, %v2980_v1  ;;  %v3340_v53 = vpop.f32.mrb[18].mxu1 }
 0x121   : > { %2602 = vmatmul.mubr.f32.gmra.mrb[40].mxu1 %v1104_v55  ;;  %v2544_v55 = vpop.f32.mrb[19].mxu1 }
 0x122   : > { %v808_v32 = vpop.f32.mrb[20].mxu0 }
 0x123   : > { %v809_v35 = vadd.f32 %v3269_v5, %v808_v32  ;;  %v2415_v56 = vpop.f32.mrb[21].mxu0  ;;  %v3342_v32 = vpop.f32.mrb[20].mxu1 }
 0x124   : > { %v811_v58 = vpop.f32.mrb[22].mxu0 }
 0x125   : > { %v1105_v59 = vmax.f32 %v809_v35, 0.0  ;;  %v812_v60 = vadd.f32 %v3269_v5, %v811_v58  ;;  %v2416_v61 = vpop.f32.mrb[23].mxu0  ;;  %v2547_v35 = vpop.f32.mrb[21].mxu1 }
 0x127   : > { %v1106_v62 = vmax.f32 %v812_v60, 0.0  ;;  %2522 = vmatmul.mubr.bf16.gmra.mrb[128].mxu0 %v2954_v57  ;;  %2604 = vmatprep.mubr.f32.mxu1 %v1105_v59  ;;  %v3344_v57 = vpop.f32.mrb[22].mxu1 }
 0x128   : > { %v2548_v60 = vpop.f32.mrb[23].mxu1 }
 0x129   : > { %2605 = vmatmul.mubr.f32.gmra.mrb[42].mxu1 %v1106_v62 }
 0x12a   : > { %v816_v40 = vpop.f32.mrb[24].mxu0 }
 0x12b   : > { %v817_v63 = vadd.f32 %v3269_v5, %v816_v40  ;;  %v2419_v0 = vpop.f32.mrb[25].mxu0  ;;  %v3347_v62 = vpop.f32.mrb[24].mxu1 }
 0x12c   : > { %v819_v2 = vpop.f32.mrb[26].mxu0 }
 0x12d   : > { %v1107_v3 = vmax.f32 %v817_v63, 0.0  ;;  %v820_v4 = vadd.f32 %v3269_v5, %v819_v2  ;;  %v2420_v6 = vpop.f32.mrb[27].mxu0  ;;  %v2551_v2 = vpop.f32.mrb[25].mxu1 }
 0x12f   : > { %v1108_v43 = vmax.f32 %v820_v4, 0.0  ;;  %2607 = vmatprep.mubr.f32.mxu1 %v1107_v3  ;;  %v3350_v3 = vpop.f32.mrb[26].mxu1 }
 0x130   : > { %v2552_v6 = vpop.f32.mrb[27].mxu1 }
 0x131   : > { %2608 = vmatmul.mubr.f32.gmra.mrb[44].mxu1 %v1108_v43 }
 0x132   : > { %v824_v7 = vpop.f32.mrb[28].mxu0 }
 0x133   : > { %v825_v8 = vadd.f32 %v3269_v5, %v824_v7  ;;  %v2423_v9 = vpop.f32.mrb[29].mxu0  ;;  %v3352_v43 = vpop.f32.mrb[28].mxu1 }
 0x134   : > { %v827_v10 = vpop.f32.mrb[30].mxu0  ;;  %v2555_v7 = vpop.f32.mrb[29].mxu1 }
 0x135   : > { %v1109_v12 = vmax.f32 %v825_v8, 0.0  ;;  %v828_v13 = vadd.f32 %v3269_v5, %v827_v10  ;;  %v2424_v14 = vpop.f32.mrb[31].mxu0  ;;  %v3354_v9 = vpop.f32.mrb[30].mxu1 }
 0x137   : > { %v1110_v17 = vmax.f32 %v828_v13, 0.0  ;;  %2610 = vmatprep.mubr.f32.mxu1 %v1109_v12  ;;  %v2556_v13 = vpop.f32.mrb[31].mxu1 }
 0x139   : > { %2611 = vmatmul.mubr.f32.gmra.mrb[46].mxu1 %v1110_v17 }
 0x13a   : > { %v832_v21 = vpop.f32.mrb[32].mxu0 }
 0x13b   : > { %v833_v23 = vadd.f32 %v3269_v5, %v832_v21  ;;  %v2427_v25 = vpop.f32.mrb[33].mxu0 }
 0x13c   : > { %v835_v28 = vpop.f32.mrb[34].mxu0 }
 0x13d   : > { %v1111_v30 = vmax.f32 %v833_v23, 0.0  ;;  %v836_v31 = vadd.f32 %v3269_v5, %v835_v28  ;;  %v2428_v33 = vpop.f32.mrb[35].mxu0 }
 0x13f   : > { %v1112_v38 = vmax.f32 %v836_v31, 0.0  ;;  %2613 = vmatprep.mubr.f32.mxu1 %v1111_v30 }
 0x141   : > { %2614 = vmatmul.mubr.f32.gmra.mrb[48].mxu1 %v1112_v38 }
 0x142   : > { %v840_v44 = vpop.f32.mrb[36].mxu0 }
 0x143   : > { %v841_v46 = vadd.f32 %v3269_v5, %v840_v44  ;;  %v2431_v47 = vpop.f32.mrb[37].mxu0 }
 0x144   : > { %v843_v24 = vpop.f32.mrb[38].mxu0 }
 0x145   : > { %v1113_v49 = vmax.f32 %v841_v46, 0.0  ;;  %v844_v50 = vadd.f32 %v3269_v5, %v843_v24  ;;  %v2432_v51 = vpop.f32.mrb[39].mxu0 }
 0x147   : > { %v1114_v54 = vmax.f32 %v844_v50, 0.0  ;;  %2616 = vmatprep.mubr.f32.mxu1 %v1113_v49 }
 0x149   : > { %2617 = vmatmul.mubr.f32.gmra.mrb[50].mxu1 %v1114_v54 }
 0x14a   : > { %v848_v56 = vpop.f32.mrb[40].mxu0 }
 0x14b   : > { %v849_v58 = vadd.f32 %v3269_v5, %v848_v56  ;;  %v2435_v59 = vpop.f32.mrb[41].mxu0 }
 0x14c   : > { %v851_v61 = vpop.f32.mrb[42].mxu0 }
 0x14d   : > { %v1115_v40 = vmax.f32 %v849_v58, 0.0  ;;  %v852_v63 = vadd.f32 %v3269_v5, %v851_v61  ;;  %v2436_v0 = vpop.f32.mrb[43].mxu0 }
 0x14f   : > { %v1116_v4 = vmax.f32 %v852_v63, 0.0  ;;  %2619 = vmatprep.mubr.f32.mxu1 %v1115_v40 }
 0x151   : > { %2620 = vmatmul.mubr.f32.gmra.mrb[52].mxu1 %v1116_v4 }
 0x152   : > { %v856_v8 = vpop.f32.mrb[44].mxu0 }
 0x153   : > { %v857_v10 = vadd.f32 %v3269_v5, %v856_v8  ;;  %v2439_v12 = vpop.f32.mrb[45].mxu0 }
 0x154   : > { %v859_v14 = vpop.f32.mrb[46].mxu0 }
 0x155   : > { %v1117_v15 = vmax.f32 %v857_v10, 0.0  ;;  %v860_v17 = vadd.f32 %v3269_v5, %v859_v14  ;;  %v2440_v18 = vpop.f32.mrb[47].mxu0 }
 0x157   : > { %v1118_v20 = vmax.f32 %v860_v17, 0.0  ;;  %2622 = vmatprep.mubr.f32.mxu1 %v1117_v15 }
 0x159   : > { %2623 = vmatmul.mubr.f32.gmra.mrb[54].mxu1 %v1118_v20 }
 0x15a   : > { %v864_v21 = vpop.f32.mrb[48].mxu0 }
 0x15b   : > { %v865_v23 = vadd.f32 %v3269_v5, %v864_v21  ;;  %v2443_v25 = vpop.f32.mrb[49].mxu0 }
 0x15c   : > { %v867_v26 = vpop.f32.mrb[50].mxu0 }
 0x15d   : > { %v1119_v28 = vmax.f32 %v865_v23, 0.0  ;;  %v868_v30 = vadd.f32 %v3269_v5, %v867_v26  ;;  %v2444_v31 = vpop.f32.mrb[51].mxu0 }
 0x15f   : > { %v1120_v33 = vmax.f32 %v868_v30, 0.0  ;;  %2625 = vmatprep.mubr.f32.mxu1 %v1119_v28 }
 0x161   : > { %2626 = vmatmul.mubr.f32.gmra.mrb[56].mxu1 %v1120_v33  ;;  %v1865_v33 = vld [vmem:[%s3619_s3 + $0x60] sm:$0xff] }
 0x162   : > { %v872_v34 = vpop.f32.mrb[52].mxu0 }
 0x163   : > { %v873_v38 = vadd.f32 %v3269_v5, %v872_v34  ;;  %v2447_v39 = vpop.f32.mrb[53].mxu0  ;;  %v1866_v34 = vld [vmem:[%s3619_s3 + $0x68] sm:$0xff] }
 0x164   : > { %v875_v42 = vpop.f32.mrb[54].mxu0 }
 0x165   : > { %v1121_v44 = vmax.f32 %v873_v38, 0.0  ;;  %v876_v46 = vadd.f32 %v3269_v5, %v875_v42  ;;  %v2448_v47 = vpop.f32.mrb[55].mxu0 }
 0x167   : > { %v1122_v48 = vmax.f32 %v876_v46, 0.0  ;;  %2628 = vmatprep.mubr.f32.mxu1 %v1121_v44  ;;  %v2833_v44 = vpack.c.bf16 %v1866_v34, %v1865_v33 }
 0x169   : > { %2629 = vmatmul.mubr.f32.gmra.mrb[58].mxu1 %v1122_v48 }
 0x16a   : > { %v880_v24 = vpop.f32.mrb[56].mxu0  ;;  %2834 = vmatpush3.bf16.msra.mxu1 %v2833_v44 }
 0x16b   : > { %v881_v49 = vadd.f32 %v3269_v5, %v880_v24  ;;  %v2451_v50 = vpop.f32.mrb[57].mxu0  ;;  %2835 = vmatprep.subr.bf16.mxu1 %v2982_v36 }
 0x16c   : > { %v883_v51 = vpop.f32.mrb[58].mxu0 }
 0x16d   : > { %v1123_v52 = vmax.f32 %v881_v49, 0.0  ;;  %v884_v54 = vadd.f32 %v3269_v5, %v883_v51  ;;  %v2452_v55 = vpop.f32.mrb[59].mxu0 }
 0x16f   : > { %v1124_v35 = vmax.f32 %v884_v54, 0.0  ;;  %2631 = vmatprep.mubr.f32.mxu1 %v1123_v52 }
 0x171   : > { %2632 = vmatmul.mubr.f32.gmra.mrb[60].mxu1 %v1124_v35 }
 0x172   : > { %v888_v56 = vpop.f32.mrb[60].mxu0 }
 0x173   : > { %v889_v58 = vadd.f32 %v3269_v5, %v888_v56  ;;  %v2455_v59 = vpop.f32.mrb[61].mxu0 }
 0x174   : > { %v891_v60 = vpop.f32.mrb[62].mxu0 }
 0x175   : > { %v1125_v61 = vmax.f32 %v889_v58, 0.0  ;;  %v892_v40 = vadd.f32 %v3269_v5, %v891_v60  ;;  %v2456_v63 = vpop.f32.mrb[63].mxu0 }
 0x176   : > { %v1867_v63 = vld [vmem:[%s3619_s3 + $0x70] sm:$0xff] }
 0x177   : > { %v1126_v0 = vmax.f32 %v892_v40, 0.0  ;;  %2634 = vmatprep.mubr.f32.mxu1 %v1125_v61 }
 0x179   : > { %2635 = vmatmul.mubr.f32.gmra.mrb[62].mxu1 %v1126_v0  ;;  %v1868_v0 = vld [vmem:[%s3619_s3 + $0x78] sm:$0xff] }
 0x17a   : > { %v896_v2 = vpop.f32.mrb[64].mxu0 }
 0x17b   : > { %v897_v4 = vadd.f32 %v3269_v5, %v896_v2  ;;  %v2459_v6 = vpop.f32.mrb[65].mxu0  ;;  %v2836_v2 = vpack.c.bf16 %v1868_v0, %v1867_v63 }
 0x17c   : > { %v899_v7 = vpop.f32.mrb[66].mxu0 }
 0x17d   : > { %v1127_v8 = vmax.f32 %v897_v4, 0.0  ;;  %v900_v10 = vadd.f32 %v3269_v5, %v899_v7  ;;  %v2460_v12 = vpop.f32.mrb[67].mxu0  ;;  %2837 = vmatpush3.bf16.msra.mxu1 %v2836_v2 }
 0x17e   : > { %2838 = vmatprep.subr.bf16.mxu1 %v2982_v36 }
 0x17f   : > { %v1128_v13 = vmax.f32 %v900_v10, 0.0  ;;  %2637 = vmatprep.mubr.f32.mxu1 %v1127_v8 }
 0x181   : > { %2638 = vmatmul.mubr.f32.gmra.mrb[64].mxu1 %v1128_v13 }
 0x182   : > { %v904_v14 = vpop.f32.mrb[68].mxu0 }
 0x183   : > { %v905_v15 = vadd.f32 %v3269_v5, %v904_v14  ;;  %v2463_v17 = vpop.f32.mrb[69].mxu0 }
 0x184   : > { %v907_v18 = vpop.f32.mrb[70].mxu0 }
 0x185   : > { %v1129_v20 = vmax.f32 %v905_v15, 0.0  ;;  %v908_v21 = vadd.f32 %v3269_v5, %v907_v18  ;;  %v2464_v23 = vpop.f32.mrb[71].mxu0 }
 0x187   : > { %v1130_v25 = vmax.f32 %v908_v21, 0.0  ;;  %2640 = vmatprep.mubr.f32.mxu1 %v1129_v20 }
 0x189   : > { %2641 = vmatmul.mubr.f32.gmra.mrb[66].mxu1 %v1130_v25 }
 0x18a   : > { %v912_v26 = vpop.f32.mrb[72].mxu0 }
 0x18b   : > { %v913_v28 = vadd.f32 %v3269_v5, %v912_v26  ;;  %v2467_v30 = vpop.f32.mrb[73].mxu0 }
 0x18c   : > { %v915_v31 = vpop.f32.mrb[74].mxu0 }
 0x18d   : > { %v1131_v38 = vmax.f32 %v913_v28, 0.0  ;;  %v916_v39 = vadd.f32 %v3269_v5, %v915_v31  ;;  %v2468_v42 = vpop.f32.mrb[75].mxu0 }
 0x18f   : > { %v1132_v46 = vmax.f32 %v916_v39, 0.0  ;;  %2643 = vmatprep.mubr.f32.mxu1 %v1131_v38 }
 0x191   : > { %2644 = vmatmul.mubr.f32.gmra.mrb[68].mxu1 %v1132_v46 }
 0x192   : > { %v920_v47 = vpop.f32.mrb[76].mxu0 }
 0x193   : > { %v921_v48 = vadd.f32 %v3269_v5, %v920_v47  ;;  %v2471_v24 = vpop.f32.mrb[77].mxu0 }
 0x194   : > { %v923_v49 = vpop.f32.mrb[78].mxu0 }
 0x195   : > { %v1133_v50 = vmax.f32 %v921_v48, 0.0  ;;  %v924_v51 = vadd.f32 %v3269_v5, %v923_v49  ;;  %v2472_v52 = vpop.f32.mrb[79].mxu0 }
 0x197   : > { %v1134_v54 = vmax.f32 %v924_v51, 0.0  ;;  %2646 = vmatprep.mubr.f32.mxu1 %v1133_v50 }
 0x199   : > { %2647 = vmatmul.mubr.f32.gmra.mrb[70].mxu1 %v1134_v54 }
 0x19a   : > { %v928_v55 = vpop.f32.mrb[80].mxu0 }
 0x19b   : > { %v929_v35 = vadd.f32 %v3269_v5, %v928_v55  ;;  %v2475_v56 = vpop.f32.mrb[81].mxu0 }
 0x19c   : > { %v931_v58 = vpop.f32.mrb[82].mxu0 }
 0x19d   : > { %v1135_v59 = vmax.f32 %v929_v35, 0.0  ;;  %v932_v60 = vadd.f32 %v3269_v5, %v931_v58  ;;  %v2476_v61 = vpop.f32.mrb[83].mxu0 }
 0x19f   : > { %v1136_v40 = vmax.f32 %v932_v60, 0.0  ;;  %2649 = vmatprep.mubr.f32.mxu1 %v1135_v59 }
 0x1a1   : > { %2650 = vmatmul.mubr.f32.gmra.mrb[72].mxu1 %v1136_v40 }
 0x1a2   : > { %v936_v4 = vpop.f32.mrb[84].mxu0 }
 0x1a3   : > { %v937_v6 = vadd.f32 %v3269_v5, %v936_v4  ;;  %v2479_v7 = vpop.f32.mrb[85].mxu0 }
 0x1a4   : > { %v939_v8 = vpop.f32.mrb[86].mxu0 }
 0x1a5   : > { %v1137_v10 = vmax.f32 %v937_v6, 0.0  ;;  %v940_v12 = vadd.f32 %v3269_v5, %v939_v8  ;;  %v2480_v13 = vpop.f32.mrb[87].mxu0 }
 0x1a7   : > { %v1138_v14 = vmax.f32 %v940_v12, 0.0  ;;  %2652 = vmatprep.mubr.f32.mxu1 %v1137_v10  ;;  %v3405_v10 = vld [vmem:[%s3620_s4] ss:$0 sm:$0xff] }
 0x1a9   : > { %2653 = vmatmul.mubr.f32.gmra.mrb[74].mxu1 %v1138_v14 }
 0x1aa   : > { %v944_v15 = vpop.f32.mrb[88].mxu0 }
 0x1ab   : > { %v945_v17 = vadd.f32 %v3269_v5, %v944_v15  ;;  %v2483_v18 = vpop.f32.mrb[89].mxu0 }
 0x1ac   : > { %v947_v20 = vpop.f32.mrb[90].mxu0 }
 0x1ad   : > { %v1139_v21 = vmax.f32 %v945_v17, 0.0  ;;  %v948_v23 = vadd.f32 %v3269_v5, %v947_v20  ;;  %v2484_v25 = vpop.f32.mrb[91].mxu0 }
 0x1af   : > { %v1140_v26 = vmax.f32 %v948_v23, 0.0  ;;  %2655 = vmatprep.mubr.f32.mxu1 %v1139_v21 }
 0x1b1   : > { %2656 = vmatmul.mubr.f32.gmra.mrb[76].mxu1 %v1140_v26 }
 0x1b2   : > { %v952_v28 = vpop.f32.mrb[92].mxu0 }
 0x1b3   : > { %v953_v30 = vadd.f32 %v3269_v5, %v952_v28  ;;  %v2487_v31 = vpop.f32.mrb[93].mxu0 }
 0x1b4   : > { %v955_v33 = vpop.f32.mrb[94].mxu0 }
 0x1b5   : > { %v1141_v34 = vmax.f32 %v953_v30, 0.0  ;;  %v956_v38 = vadd.f32 %v3269_v5, %v955_v33  ;;  %v2488_v39 = vpop.f32.mrb[95].mxu0 }
 0x1b7   : > { %v1142_v42 = vmax.f32 %v956_v38, 0.0  ;;  %2658 = vmatprep.mubr.f32.mxu1 %v1141_v34 }
 0x1b9   : > { %2659 = vmatmul.mubr.f32.gmra.mrb[78].mxu1 %v1142_v42 }
 0x1ba   : > { %v960_v44 = vpop.f32.mrb[96].mxu0 }
 0x1bb   : > { %v961_v46 = vadd.f32 %v3269_v5, %v960_v44  ;;  %v2491_v47 = vpop.f32.mrb[97].mxu0 }
 0x1bc   : > { %v963_v48 = vpop.f32.mrb[98].mxu0 }
 0x1bd   : > { %v1143_v24 = vmax.f32 %v961_v46, 0.0  ;;  %v964_v49 = vadd.f32 %v3269_v5, %v963_v48  ;;  %v2492_v50 = vpop.f32.mrb[99].mxu0 }
 0x1bf   : > { %v1144_v51 = vmax.f32 %v964_v49, 0.0  ;;  %2661 = vmatprep.mubr.f32.mxu1 %v1143_v24 }
 0x1c1   : > { %2662 = vmatmul.mubr.f32.gmra.mrb[80].mxu1 %v1144_v51 }
 0x1c2   : > { %v968_v52 = vpop.f32.mrb[100].mxu0 }
 0x1c3   : > { %v969_v54 = vadd.f32 %v3269_v5, %v968_v52  ;;  %v2495_v55 = vpop.f32.mrb[101].mxu0 }
 0x1c4   : > { %v971_v35 = vpop.f32.mrb[102].mxu0 }
 0x1c5   : > { %v1145_v56 = vmax.f32 %v969_v54, 0.0  ;;  %v972_v58 = vadd.f32 %v3269_v5, %v971_v35  ;;  %v2496_v59 = vpop.f32.mrb[103].mxu0 }
 0x1c7   : > { %v1146_v60 = vmax.f32 %v972_v58, 0.0  ;;  %2664 = vmatprep.mubr.f32.mxu1 %v1145_v56 }
 0x1c9   : > { %2665 = vmatmul.mubr.f32.gmra.mrb[82].mxu1 %v1146_v60 }
 0x1ca   : > { %v976_v61 = vpop.f32.mrb[104].mxu0 }
 0x1cb   : > { %v977_v40 = vadd.f32 %v3269_v5, %v976_v61  ;;  %v2499_v63 = vpop.f32.mrb[105].mxu0 }
 0x1cc   : > { %v979_v0 = vpop.f32.mrb[106].mxu0 }
 0x1cd   : > { %v1147_v2 = vmax.f32 %v977_v40, 0.0  ;;  %v980_v4 = vadd.f32 %v3269_v5, %v979_v0  ;;  %v2500_v6 = vpop.f32.mrb[107].mxu0 }
 0x1cf   : > { %v1148_v7 = vmax.f32 %v980_v4, 0.0  ;;  %2667 = vmatprep.mubr.f32.mxu1 %v1147_v2 }
 0x1d1   : > { %2668 = vmatmul.mubr.f32.gmra.mrb[84].mxu1 %v1148_v7 }
 0x1d2   : > { %v984_v8 = vpop.f32.mrb[108].mxu0 }
 0x1d3   : > { %v985_v12 = vadd.f32 %v3269_v5, %v984_v8  ;;  %v2503_v13 = vpop.f32.mrb[109].mxu0 }
 0x1d4   : > { %v987_v14 = vpop.f32.mrb[110].mxu0  ;;  %v2591_v15 = vpop.f32.mrb[32].mxu1 }
 0x1d5   : > { %v1149_v17 = vmax.f32 %v985_v12, 0.0  ;;  %v988_v18 = vadd.f32 %v3269_v5, %v987_v14  ;;  %v1272_v20 = vadd.f32 %v2591_v15, %v3405_v10  ;;  %v2504_v21 = vpop.f32.mrb[111].mxu0  ;;  %v1266_v23 = vpop.f32.mrb[33].mxu1 }
 0x1d6   : > { %v1267_v25 = vadd.f32 %v3405_v10, %v1266_v23 }
 0x1d7   : > { %v1150_v26 = vmax.f32 %v988_v18, 0.0  ;;  %v1676_v28 = vmax.f32 %v1272_v20, 0.0  ;;  %2670 = vmatprep.mubr.f32.mxu1 %v1149_v17 }
 0x1d8   : > { %v1675_v30 = vmax.f32 %v1267_v25, 0.0 }
 0x1d9   : > { %2671 = vmatmul.mubr.f32.gmra.mrb[86].mxu1 %v1150_v26 }
 0x1da   : > { %v1758_v31 = vadd.f32 %v1676_v28, %v1675_v30  ;;  %v992_v33 = vpop.f32.mrb[112].mxu0 }
 0x1db   : > { %v993_v34 = vadd.f32 %v3269_v5, %v992_v33  ;;  %v2507_v38 = vpop.f32.mrb[113].mxu0 }
 0x1dc   : > { %v995_v39 = vpop.f32.mrb[114].mxu0  ;;  %v2594_v42 = vpop.f32.mrb[34].mxu1 }
 0x1dd   : > { %v1151_v44 = vmax.f32 %v993_v34, 0.0  ;;  %v996_v46 = vadd.f32 %v3269_v5, %v995_v39  ;;  %v2508_v47 = vpop.f32.mrb[115].mxu0  ;;  %v1276_v48 = vpop.f32.mrb[35].mxu1  ;;  %v1282_v24 = vadd.f32 %v2594_v42, %v3405_v10 }
 0x1de   : > { %v1277_v49 = vadd.f32 %v3405_v10, %v1276_v48 }
 0x1df   : > { %v1152_v50 = vmax.f32 %v996_v46, 0.0  ;;  %2673 = vmatprep.mubr.f32.mxu1 %v1151_v44  ;;  %v1678_v52 = vmax.f32 %v1282_v24, 0.0 }
 0x1e0   : > { %v1677_v51 = vmax.f32 %v1277_v49, 0.0 }
 0x1e1   : > { %2674 = vmatmul.mubr.f32.gmra.mrb[88].mxu1 %v1152_v50 }
 0x1e2   : > { %v1759_v54 = vadd.f32 %v1758_v31, %v1677_v51  ;;  %v1000_v55 = vpop.f32.mrb[116].mxu0 }
 0x1e3   : > { %v1001_v35 = vadd.f32 %v3269_v5, %v1000_v55  ;;  %v2511_v56 = vpop.f32.mrb[117].mxu0 }
 0x1e4   : > { %v1760_v58 = vadd.f32 %v1759_v54, %v1678_v52  ;;  %v1003_v59 = vpop.f32.mrb[118].mxu0  ;;  %v2597_v60 = vpop.f32.mrb[36].mxu1 }
 0x1e5   : > { %v1153_v61 = vmax.f32 %v1001_v35, 0.0  ;;  %v1004_v40 = vadd.f32 %v3269_v5, %v1003_v59  ;;  %v2512_v63 = vpop.f32.mrb[119].mxu0  ;;  %v1286_v0 = vpop.f32.mrb[37].mxu1  ;;  %v1292_v2 = vadd.f32 %v2597_v60, %v3405_v10 }
 0x1e6   : > { %v1287_v4 = vadd.f32 %v3405_v10, %v1286_v0 }
 0x1e7   : > { %v1154_v6 = vmax.f32 %v1004_v40, 0.0  ;;  %2676 = vmatprep.mubr.f32.mxu1 %v1153_v61  ;;  %v1680_v8 = vmax.f32 %v1292_v2, 0.0  ;;  %v1033_v40 = vadd.f32 %v3269_v5, %v3317_v11  ;;  %v1041_v11 = vadd.f32 %v3269_v5, %v3322_v19 }
 0x1e8   : > { %v1679_v7 = vmax.f32 %v1287_v4, 0.0 }
 0x1e9   : > { %2677 = vmatmul.mubr.f32.gmra.mrb[90].mxu1 %v1154_v6 }
 0x1ea   : > { %v1761_v12 = vadd.f32 %v1760_v58, %v1679_v7  ;;  %v1008_v13 = vpop.f32.mrb[120].mxu0 }
 0x1eb   : > { %v1009_v14 = vadd.f32 %v3269_v5, %v1008_v13  ;;  %v2515_v15 = vpop.f32.mrb[121].mxu0 }
 0x1ec   : > { %v1762_v17 = vadd.f32 %v1761_v12, %v1680_v8  ;;  %v1011_v18 = vpop.f32.mrb[122].mxu0  ;;  %v2600_v20 = vpop.f32.mrb[38].mxu1 }
 0x1ed   : > { %v1155_v21 = vmax.f32 %v1009_v14, 0.0  ;;  %v1012_v23 = vadd.f32 %v3269_v5, %v1011_v18  ;;  %v2516_v25 = vpop.f32.mrb[123].mxu0  ;;  %v1296_v26 = vpop.f32.mrb[39].mxu1  ;;  %v1302_v28 = vadd.f32 %v2600_v20, %v3405_v10  ;;  %v1036_v14 = vadd.f32 %v3269_v5, %v3320_v16 }
 0x1ee   : > { %v1297_v30 = vadd.f32 %v3405_v10, %v1296_v26  ;;  %v1044_v25 = vadd.f32 %v3269_v5, %v3324_v22  ;;  %v1163_v26 = vmax.f32 %v1041_v11, 0.0  ;;  %v1057_v22 = vadd.f32 %v3269_v5, %v3332_v41 }
 0x1ef   : > { %v1156_v31 = vmax.f32 %v1012_v23, 0.0  ;;  %2679 = vmatprep.mubr.f32.mxu1 %v1155_v21  ;;  %v1682_v34 = vmax.f32 %v1302_v28, 0.0  ;;  %v1162_v23 = vmax.f32 %v1036_v14, 0.0  ;;  %v1049_v28 = vadd.f32 %v3269_v5, %v3327_v29 }
 0x1f0   : > { %v1681_v33 = vmax.f32 %v1297_v30, 0.0 }
 0x1f1   : > { %2680 = vmatmul.mubr.f32.gmra.mrb[92].mxu1 %v1156_v31 }
 0x1f2   : > { %v1763_v38 = vadd.f32 %v1762_v17, %v1681_v33  ;;  %v1016_v39 = vpop.f32.mrb[124].mxu0  ;;  %v1161_v17 = vmax.f32 %v1033_v40, 0.0 }
 0x1f3   : > { %v1017_v42 = vadd.f32 %v3269_v5, %v1016_v39  ;;  %v2519_v44 = vpop.f32.mrb[125].mxu0  ;;  %v1165_v39 = vmax.f32 %v1049_v28, 0.0 }
 0x1f4   : > { %v1764_v46 = vadd.f32 %v1763_v38, %v1682_v34  ;;  %v1019_v47 = vpop.f32.mrb[126].mxu0  ;;  %v2603_v48 = vpop.f32.mrb[40].mxu1  ;;  %v1164_v34 = vmax.f32 %v1044_v25, 0.0  ;;  %v1052_v38 = vadd.f32 %v3269_v5, %v3330_v37 }
 0x1f5   : > { %v1157_v24 = vmax.f32 %v1017_v42, 0.0  ;;  %v1020_v49 = vadd.f32 %v3269_v5, %v1019_v47  ;;  %v2520_v50 = vpop.f32.mrb[127].mxu0  ;;  %v1306_v51 = vpop.f32.mrb[41].mxu1  ;;  %v1312_v52 = vadd.f32 %v2603_v48, %v3405_v10  ;;  %v1060_v47 = vadd.f32 %v3269_v5, %v3334_v45 }
 0x1f6   : > { %v1307_v54 = vadd.f32 %v3405_v10, %v1306_v51  ;;  %v1167_v48 = vmax.f32 %v1057_v22, 0.0  ;;  %v1073_v45 = vadd.f32 %v3269_v5, %v3342_v32  ;;  %v1089_v32 = vadd.f32 %v3269_v5, %v3352_v43  ;;  %v2955_v43 = vld [vmem:[%s3618_s2] ss:$0 sm:$0xff] }
 0x1f7   : > { %v1158_v55 = vmax.f32 %v1020_v49, 0.0  ;;  %2682 = vmatprep.mubr.f32.mxu1 %v1157_v24  ;;  %v1684_v56 = vmax.f32 %v1312_v52, 0.0  ;;  %v1065_v24 = vadd.f32 %v3269_v5, %v3337_v27  ;;  %v1168_v52 = vmax.f32 %v1060_v47, 0.0 }
 0x1f8   : > { %v1683_v35 = vmax.f32 %v1307_v54, 0.0  ;;  %v1068_v54 = vadd.f32 %v3269_v5, %v3340_v53  ;;  %v1092_v14 = vadd.f32 %v2955_v43, %v3354_v9 }
 0x1f9   : > { %2683 = vmatmul.mubr.f32.gmra.mrb[94].mxu1 %v1158_v55  ;;  %v1169_v55 = vmax.f32 %v1065_v24, 0.0 }
 0x1fa   : > { %v1765_v58 = vadd.f32 %v1764_v46, %v1683_v35  ;;  %v1024_v59 = vpop.f32.mrb[128].mxu0  ;;  %v1166_v46 = vmax.f32 %v1052_v38, 0.0 }
 0x1fb   : > { %v1025_v60 = vadd.f32 %v3269_v5, %v1024_v59  ;;  %v2523_v61 = vpop.f32.mrb[129].mxu0  ;;  %v1076_v59 = vadd.f32 %v3269_v5, %v3344_v57  ;;  %v1084_v57 = vadd.f32 %v3269_v5, %v3350_v3 }
 0x1fc   : > { %v1766_v63 = vadd.f32 %v1765_v58, %v1684_v56  ;;  %v1027_v0 = vpop.f32.mrb[130].mxu0  ;;  %v2606_v2 = vpop.f32.mrb[42].mxu1  ;;  %v1170_v58 = vmax.f32 %v1068_v54, 0.0  ;;  %v1081_v61 = vadd.f32 %v3269_v5, %v3347_v62  ;;  %v1175_v62 = vmax.f32 %v1089_v32, 0.0 }
 0x1fd   : > { %v1159_v4 = vmax.f32 %v1025_v60, 0.0  ;;  %v1028_v6 = vadd.f32 %v3269_v5, %v1027_v0  ;;  %v2524_v7 = vpop.f32.mrb[131].mxu0  ;;  %v1316_v8 = vpop.f32.mrb[43].mxu1  ;;  %v1322_v12 = vadd.f32 %v2606_v2, %v3405_v10  ;;  %v1171_v60 = vmax.f32 %v1073_v45, 0.0 }
 0x1fe   : > { %v1317_v13 = vadd.f32 %v3405_v10, %v1316_v8 }
 0x1ff   : > { %v1160_v15 = vmax.f32 %v1028_v6, 0.0  ;;  %2685 = vmatprep.mubr.f32.mxu1 %v1159_v4  ;;  %v1686_v20 = vmax.f32 %v1322_v12, 0.0  ;;  %v1172_v4 = vmax.f32 %v1076_v59, 0.0  ;;  %v1173_v6 = vmax.f32 %v1081_v61, 0.0 }
 0x200   : > { %v1685_v18 = vmax.f32 %v1317_v13, 0.0  ;;  %v1174_v13 = vmax.f32 %v1084_v57, 0.0 }
 0x201   : > { %2686 = vmatmul.mubr.f32.gmra.mrb[96].mxu1 %v1160_v15 }
 0x202   : > { %v1767_v21 = vadd.f32 %v1766_v63, %v1685_v18  ;;  %2688 = vmatprep.mubr.f32.mxu1 %v1161_v17  ;;  %v1851_v18 = vld [vmem:[%s3618_s2] sm:$0x1] }
 0x204   : > { %v1768_v16 = vadd.f32 %v1767_v21, %v1686_v20  ;;  %v2609_v30 = vpop.f32.mrb[44].mxu1  ;;  %v1176_v20 = vmax.f32 %v1092_v14, 0.0 }
 0x205   : > { %v1326_v31 = vpop.f32.mrb[45].mxu1  ;;  %2689 = vmatmul.mubr.f32.gmra.mrb[98].mxu1 %v1162_v23  ;;  %v1332_v33 = vadd.f32 %v2609_v30, %v3405_v10  ;;  %v1852_v23 = vmax.f32 %v1851_v18, 0.0 }
 0x206   : > { %v1327_v19 = vadd.f32 %v3405_v10, %v1326_v31  ;;  %2691 = vmatprep.mubr.f32.mxu1 %v1163_v26 }
 0x207   : > { %v1688_v29 = vmax.f32 %v1332_v33, 0.0 }
 0x208   : > { %v1687_v42 = vmax.f32 %v1327_v19, 0.0 }
 0x209   : > { %2692 = vmatmul.mubr.f32.gmra.mrb[100].mxu1 %v1164_v34 }
 0x20a   : > { %v1769_v44 = vadd.f32 %v1768_v16, %v1687_v42  ;;  %2694 = vmatprep.mubr.f32.mxu1 %v1165_v39 }
 0x20c   : > { %v1770_v49 = vadd.f32 %v1769_v44, %v1688_v29  ;;  %v2612_v50 = vpop.f32.mrb[46].mxu1 }
 0x20d   : > { %v1336_v37 = vpop.f32.mrb[47].mxu1  ;;  %2695 = vmatmul.mubr.f32.gmra.mrb[102].mxu1 %v1166_v46  ;;  %v1342_v51 = vadd.f32 %v2612_v50, %v3405_v10 }
 0x20e   : > { %v1337_v41 = vadd.f32 %v3405_v10, %v1336_v37  ;;  %2697 = vmatprep.mubr.f32.mxu1 %v1167_v48 }
 0x20f   : > { %v1690_v27 = vmax.f32 %v1342_v51, 0.0 }
 0x210   : > { %v1689_v35 = vmax.f32 %v1337_v41, 0.0 }
 0x211   : > { %2698 = vmatmul.mubr.f32.gmra.mrb[104].mxu1 %v1168_v52 }
 0x212   : > { %v1771_v56 = vadd.f32 %v1770_v49, %v1689_v35  ;;  %2700 = vmatprep.mubr.f32.mxu1 %v1169_v55 }
 0x214   : > { %v1772_v40 = vadd.f32 %v1771_v56, %v1690_v27  ;;  %v2615_v63 = vpop.f32.mrb[48].mxu1 }
 0x215   : > { %v1346_v53 = vpop.f32.mrb[49].mxu1  ;;  %2701 = vmatmul.mubr.f32.gmra.mrb[106].mxu1 %v1170_v58  ;;  %v1352_v0 = vadd.f32 %v2615_v63, %v3405_v10 }
 0x216   : > { %v1347_v2 = vadd.f32 %v3405_v10, %v1346_v53  ;;  %2703 = vmatprep.mubr.f32.mxu1 %v1171_v60 }
 0x217   : > { %v1692_v8 = vmax.f32 %v1352_v0, 0.0 }
 0x218   : > { %v1691_v7 = vmax.f32 %v1347_v2, 0.0 }
 0x219   : > { %2704 = vmatmul.mubr.f32.gmra.mrb[108].mxu1 %v1172_v4 }
 0x21a   : > { %v1773_v12 = vadd.f32 %v1772_v40, %v1691_v7  ;;  %2706 = vmatprep.mubr.f32.mxu1 %v1173_v6 }
 0x21c   : > { %v1774_v15 = vadd.f32 %v1773_v12, %v1692_v8  ;;  %v2618_v17 = vpop.f32.mrb[50].mxu1 }
 0x21d   : > { %v1356_v11 = vpop.f32.mrb[51].mxu1  ;;  %2707 = vmatmul.mubr.f32.gmra.mrb[110].mxu1 %v1174_v13  ;;  %v1362_v5 = vadd.f32 %v2618_v17, %v3405_v10 }
 0x21e   : > { %v1357_v3 = vadd.f32 %v3405_v10, %v1356_v11  ;;  %2709 = vmatprep.mubr.f32.mxu1 %v1175_v62 }
 0x21f   : > { %v1694_v25 = vmax.f32 %v1362_v5, 0.0 }
 0x220   : > { %v1693_v21 = vmax.f32 %v1357_v3, 0.0 }
 0x221   : > { %2710 = vmatmul.mubr.f32.gmra.mrb[112].mxu1 %v1176_v20 }
 0x222   : > { %v1775_v26 = vadd.f32 %v1774_v15, %v1693_v21  ;;  %2744 = vmatprep.mubr.msk.f32.mxu1 %vm2981_vm0, %v2980_v1 }
 0x224   : > { %v1776_v9 = vadd.f32 %v1775_v26, %v1694_v25  ;;  %v2621_v28 = vpop.f32.mrb[52].mxu1 }
 0x225   : > { %v1366_v16 = vpop.f32.mrb[53].mxu1  ;;  %2745 = vmatmul.mubr.f32.vlgmr.msra.gmra.mrb[114].mxu1 %v1852_v23  ;;  %v1372_v30 = vadd.f32 %v2621_v28, %v3405_v10 }
 0x226   : > { %v1367_v31 = vadd.f32 %v3405_v10, %v1366_v16  ;;  %2779 = vmatprep.mubr.msk.f32.mxu1 %vm2981_vm0, %v2980_v1 }
 0x227   : > { %v1696_v19 = vmax.f32 %v1372_v30, 0.0 }
 0x228   : > { %v1695_v33 = vmax.f32 %v1367_v31, 0.0 }
 0x22a   : > { %v1777_v34 = vadd.f32 %v1776_v9, %v1695_v33 }
 0x22c   : > { %v1778_v38 = vadd.f32 %v1777_v34, %v1696_v19  ;;  %v2624_v39 = vpop.f32.mrb[54].mxu1 }
 0x22d   : > { %v1376_v22 = vpop.f32.mrb[55].mxu1  ;;  %v1382_v42 = vadd.f32 %v2624_v39, %v3405_v10 }
 0x22e   : > { %v1377_v29 = vadd.f32 %v3405_v10, %v1376_v22 }
 0x22f   : > { %v1698_v46 = vmax.f32 %v1382_v42, 0.0 }
 0x230   : > { %v1697_v44 = vmax.f32 %v1377_v29, 0.0  ;;  %v1959_v29 = vld [vmem:[%s3621_s5] sm:$0xff] }
 0x232   : > { %v1779_v47 = vadd.f32 %v1778_v38, %v1697_v44  ;;  %v1960_v44 = vld [vmem:[%s3621_s5 + $0x8] sm:$0xff] }
 0x234   : > { %v2627_v48 = vpop.f32.mrb[56].mxu1  ;;  %v1780_v24 = vadd.f32 %v1779_v47, %v1698_v46  ;;  %v2839_v47 = vpack.c.bf16 %v1960_v44, %v1959_v29 }
 0x235   : > { %v1386_v49 = vpop.f32.mrb[57].mxu1  ;;  %v1392_v50 = vadd.f32 %v2627_v48, %v3405_v10 }
 0x236   : > { %v1387_v1 = vadd.f32 %v3405_v10, %v1386_v49  ;;  %2840 = vmatpush3.bf16.msra.mxu1 %v2839_v47 }
 0x237   : > { %v1700_v51 = vmax.f32 %v1392_v50, 0.0  ;;  %2841 = vmatprep.subr.bf16.mxu1 %v2982_v36  ;;  %v1961_v50 = vld [vmem:[%s3621_s5 + $0x10] sm:$0xff] }
 0x238   : > { %v1699_v37 = vmax.f32 %v1387_v1, 0.0  ;;  %v1962_v1 = vld [vmem:[%s3621_s5 + $0x18] sm:$0xff] }
 0x23a   : > { %v1781_v41 = vadd.f32 %v1780_v24, %v1699_v37  ;;  %v2842_v37 = vpack.c.bf16 %v1962_v1, %v1961_v50 }
 0x23c   : > { %v2630_v52 = vpop.f32.mrb[58].mxu1  ;;  %v1782_v54 = vadd.f32 %v1781_v41, %v1700_v51  ;;  %2843 = vmatpush3.bf16.msra.mxu1 %v2842_v37 }
 0x23d   : > { %v1396_v55 = vpop.f32.mrb[59].mxu1  ;;  %v1402_v45 = vadd.f32 %v2630_v52, %v3405_v10  ;;  %2844 = vmatprep.subr.bf16.mxu1 %v2982_v36 }
 0x23e   : > { %v1397_v35 = vadd.f32 %v3405_v10, %v1396_v55  ;;  %v1963_v55 = vld [vmem:[%s3621_s5 + $0x20] sm:$0xff] }
 0x23f   : > { %v1702_v56 = vmax.f32 %v1402_v45, 0.0  ;;  %v1964_v45 = vld [vmem:[%s3621_s5 + $0x28] sm:$0xff] }
 0x240   : > { %v1701_v27 = vmax.f32 %v1397_v35, 0.0 }
 0x242   : > { %v1783_v58 = vadd.f32 %v1782_v54, %v1701_v27  ;;  %v2845_v27 = vpack.c.bf16 %v1964_v45, %v1963_v55 }
 0x244   : > { %v2633_v59 = vpop.f32.mrb[60].mxu1  ;;  %v1784_v60 = vadd.f32 %v1783_v58, %v1702_v56  ;;  %2846 = vmatpush3.bf16.msra.mxu1 %v2845_v27 }
 0x245   : > { %v1406_v61 = vpop.f32.mrb[61].mxu1  ;;  %v1412_v40 = vadd.f32 %v2633_v59, %v3405_v10  ;;  %2847 = vmatprep.subr.bf16.mxu1 %v2982_v36 }
 0x246   : > { %v1407_v63 = vadd.f32 %v3405_v10, %v1406_v61  ;;  %v1966_v61 = vld [vmem:[%s3621_s5 + $0x38] sm:$0xff] }
 0x247   : > { %v1704_v32 = vmax.f32 %v1412_v40, 0.0 }
 0x248   : > { %v1703_v53 = vmax.f32 %v1407_v63, 0.0 }
 0x24a   : > { %v1785_v0 = vadd.f32 %v1784_v60, %v1703_v53  ;;  %v1965_v60 = vld [vmem:[%s3621_s5 + $0x30] sm:$0xff] }
 0x24b   : > { %v2848_v40 = vpack.c.bf16 %v1966_v61, %v1965_v60 }
 0x24c   : > { %v2636_v2 = vpop.f32.mrb[62].mxu1  ;;  %v1786_v4 = vadd.f32 %v1785_v0, %v1704_v32 }
 0x24d   : > { %v1416_v57 = vpop.f32.mrb[63].mxu1  ;;  %v1422_v6 = vadd.f32 %v2636_v2, %v3405_v10  ;;  %2849 = vmatpush3.bf16.msra.mxu1 %v2848_v40  ;;  %v1967_v2 = vld [vmem:[%s3621_s5 + $0x40] sm:$0xff] }
 0x24e   : > { %v1417_v7 = vadd.f32 %v3405_v10, %v1416_v57  ;;  %2850 = vmatprep.subr.bf16.mxu1 %v2982_v36 }
 0x24f   : > { %v1706_v8 = vmax.f32 %v1422_v6, 0.0 }
 0x250   : > { %v1705_v62 = vmax.f32 %v1417_v7, 0.0 }
 0x252   : > { %v1787_v12 = vadd.f32 %v1786_v4, %v1705_v62  ;;  %v1968_v4 = vld [vmem:[%s3621_s5 + $0x48] sm:$0xff] }
 0x253   : > { %v2851_v6 = vpack.c.bf16 %v1968_v4, %v1967_v2 }
 0x254   : > { %v2639_v13 = vpop.f32.mrb[64].mxu1  ;;  %v1788_v43 = vadd.f32 %v1787_v12, %v1706_v8  ;;  %v1969_v12 = vld [vmem:[%s3621_s5 + $0x50] sm:$0xff] }
 0x255   : > { %v1426_v14 = vpop.f32.mrb[65].mxu1  ;;  %v1432_v15 = vadd.f32 %v2639_v13, %v3405_v10  ;;  %2852 = vmatpush3.bf16.msra.mxu1 %v2851_v6  ;;  %v1970_v13 = vld [vmem:[%s3621_s5 + $0x58] sm:$0xff] }
 0x256   : > { %v1427_v17 = vadd.f32 %v3405_v10, %v1426_v14  ;;  %2853 = vmatprep.subr.bf16.mxu1 %v2982_v36 }
 0x257   : > { %v1708_v5 = vmax.f32 %v1432_v15, 0.0 }
 0x258   : > { %v1707_v11 = vmax.f32 %v1427_v17, 0.0 }
 0x25a   : > { %v1789_v3 = vadd.f32 %v1788_v43, %v1707_v11  ;;  %v2854_v43 = vpack.c.bf16 %v1970_v13, %v1969_v12 }
 0x25c   : > { %v2642_v18 = vpop.f32.mrb[66].mxu1  ;;  %v1790_v20 = vadd.f32 %v1789_v3, %v1708_v5  ;;  %2855 = vmatpush3.bf16.msra.mxu1 %v2854_v43  ;;  %v1971_v5 = vld [vmem:[%s3621_s5 + $0x60] sm:$0xff]  ;;  %v1972_v3 = vld [vmem:[%s3621_s5 + $0x68] sm:$0xff] }
 0x25d   : > { %v1436_v21 = vpop.f32.mrb[67].mxu1  ;;  %v1442_v23 = vadd.f32 %v2642_v18, %v3405_v10  ;;  %2856 = vmatprep.subr.bf16.mxu1 %v2982_v36 }
 0x25e   : > { %v1437_v25 = vadd.f32 %v3405_v10, %v1436_v21 }
 0x25f   : > { %v1710_v9 = vmax.f32 %v1442_v23, 0.0 }
 0x260   : > { %v1709_v26 = vmax.f32 %v1437_v25, 0.0 }
 0x262   : > { %v1791_v28 = vadd.f32 %v1790_v20, %v1709_v26  ;;  %v2857_v20 = vpack.c.bf16 %v1972_v3, %v1971_v5  ;;  %v1973_v26 = vld [vmem:[%s3621_s5 + $0x70] sm:$0xff] }
 0x264   : > { %v2645_v16 = vpop.f32.mrb[68].mxu1  ;;  %v1792_v30 = vadd.f32 %v1791_v28, %v1710_v9  ;;  %2858 = vmatpush3.bf16.msra.mxu1 %v2857_v20  ;;  %v1974_v9 = vld [vmem:[%s3621_s5 + $0x78] sm:$0xff] }
 0x265   : > { %v1446_v31 = vpop.f32.mrb[69].mxu1  ;;  %v1452_v33 = vadd.f32 %v2645_v16, %v3405_v10  ;;  %2859 = vmatprep.subr.bf16.mxu1 %v2982_v36  ;;  %v2860_v28 = vpack.c.bf16 %v1974_v9, %v1973_v26 }
 0x266   : > { %v1447_v19 = vadd.f32 %v3405_v10, %v1446_v31 }
 0x267   : > { %v1712_v38 = vmax.f32 %v1452_v33, 0.0 }
 0x268   : > { %v1711_v34 = vmax.f32 %v1447_v19, 0.0  ;;  %2861 = vmatpush3.bf16.msra.mxu1 %v2860_v28 }
 0x26a   : > { %v1793_v39 = vadd.f32 %v1792_v30, %v1711_v34 }
 0x26c   : > { %v2648_v22 = vpop.f32.mrb[70].mxu1  ;;  %v1794_v42 = vadd.f32 %v1793_v39, %v1712_v38 }
 0x26d   : > { %v1456_v46 = vpop.f32.mrb[71].mxu1  ;;  %v1462_v48 = vadd.f32 %v2648_v22, %v3405_v10 }
 0x26e   : > { %v1457_v24 = vadd.f32 %v3405_v10, %v1456_v46 }
 0x26f   : > { %v1714_v51 = vmax.f32 %v1462_v48, 0.0 }
 0x270   : > { %v1713_v49 = vmax.f32 %v1457_v24, 0.0 }
 0x272   : > { %v1795_v41 = vadd.f32 %v1794_v42, %v1713_v49 }
 0x274   : > { %v2651_v52 = vpop.f32.mrb[72].mxu1  ;;  %v1796_v54 = vadd.f32 %v1795_v41, %v1714_v51 }
 0x275   : > { %v1466_v35 = vpop.f32.mrb[73].mxu1  ;;  %v1472_v56 = vadd.f32 %v2651_v52, %v3405_v10 }
 0x276   : > { %v1467_v58 = vadd.f32 %v3405_v10, %v1466_v35 }
 0x277   : > { %v1716_v63 = vmax.f32 %v1472_v56, 0.0 }
 0x278   : > { %v1715_v59 = vmax.f32 %v1467_v58, 0.0 }
 0x27a   : > { %v1797_v53 = vadd.f32 %v1796_v54, %v1715_v59 }
 0x27c   : > { %v2654_v32 = vpop.f32.mrb[74].mxu1  ;;  %v1798_v0 = vadd.f32 %v1797_v53, %v1716_v63 }
 0x27d   : > { %v1476_v57 = vpop.f32.mrb[75].mxu1  ;;  %v1482_v7 = vadd.f32 %v2654_v32, %v3405_v10 }
 0x27e   : > { %v1477_v62 = vadd.f32 %v3405_v10, %v1476_v57 }
 0x27f   : > { %v1718_v14 = vmax.f32 %v1482_v7, 0.0 }
 0x280   : > { %v1717_v8 = vmax.f32 %v1477_v62, 0.0 }
 0x282   : > { %v1799_v15 = vadd.f32 %v1798_v0, %v1717_v8 }
 0x284   : > { %v2657_v17 = vpop.f32.mrb[76].mxu1  ;;  %v1800_v11 = vadd.f32 %v1799_v15, %v1718_v14 }
 0x285   : > { %v1486_v18 = vpop.f32.mrb[77].mxu1  ;;  %v1492_v21 = vadd.f32 %v2657_v17, %v3405_v10 }
 0x286   : > { %v1487_v23 = vadd.f32 %v3405_v10, %v1486_v18 }
 0x287   : > { %v1720_v16 = vmax.f32 %v1492_v21, 0.0 }
 0x288   : > { %v1719_v25 = vmax.f32 %v1487_v23, 0.0 }
 0x28a   : > { %v1801_v30 = vadd.f32 %v1800_v11, %v1719_v25 }
 0x28c   : > { %v2660_v31 = vpop.f32.mrb[78].mxu1  ;;  %v1802_v33 = vadd.f32 %v1801_v30, %v1720_v16 }
 0x28d   : > { %v1496_v19 = vpop.f32.mrb[79].mxu1  ;;  %v1502_v34 = vadd.f32 %v2660_v31, %v3405_v10 }
 0x28e   : > { %v1497_v38 = vadd.f32 %v3405_v10, %v1496_v19 }
 0x28f   : > { %v1722_v39 = vmax.f32 %v1502_v34, 0.0 }
 0x290   : > { %v1721_v36 = vmax.f32 %v1497_v38, 0.0 }
 0x292   : > { %v1803_v22 = vadd.f32 %v1802_v33, %v1721_v36 }
 0x294   : > { %v2663_v42 = vpop.f32.mrb[80].mxu1  ;;  %v1804_v29 = vadd.f32 %v1803_v22, %v1722_v39 }
 0x295   : > { %v1506_v44 = vpop.f32.mrb[81].mxu1  ;;  %v1512_v46 = vadd.f32 %v2663_v42, %v3405_v10 }
 0x296   : > { %v1507_v47 = vadd.f32 %v3405_v10, %v1506_v44 }
 0x297   : > { %v1724_v24 = vmax.f32 %v1512_v46, 0.0 }
 0x298   : > { %v1723_v48 = vmax.f32 %v1507_v47, 0.0 }
 0x29a   : > { %v1805_v49 = vadd.f32 %v1804_v29, %v1723_v48 }
 0x29c   : > { %v2666_v50 = vpop.f32.mrb[82].mxu1  ;;  %v1806_v1 = vadd.f32 %v1805_v49, %v1724_v24 }
 0x29d   : > { %v1516_v37 = vpop.f32.mrb[83].mxu1  ;;  %v1522_v51 = vadd.f32 %v2666_v50, %v3405_v10 }
 0x29e   : > { %v1517_v41 = vadd.f32 %v3405_v10, %v1516_v37 }
 0x29f   : > { %v1726_v54 = vmax.f32 %v1522_v51, 0.0 }
 0x2a0   : > { %v1725_v52 = vmax.f32 %v1517_v41, 0.0 }
 0x2a2   : > { %v1807_v55 = vadd.f32 %v1806_v1, %v1725_v52 }
 0x2a4   : > { %v2669_v45 = vpop.f32.mrb[84].mxu1  ;;  %v1808_v35 = vadd.f32 %v1807_v55, %v1726_v54 }
 0x2a5   : > { %v1526_v27 = vpop.f32.mrb[85].mxu1  ;;  %v1532_v56 = vadd.f32 %v2669_v45, %v3405_v10 }
 0x2a6   : > { %v1527_v58 = vadd.f32 %v3405_v10, %v1526_v27 }
 0x2a7   : > { %v1728_v60 = vmax.f32 %v1532_v56, 0.0 }
 0x2a8   : > { %v1727_v59 = vmax.f32 %v1527_v58, 0.0 }
 0x2aa   : > { %v1809_v61 = vadd.f32 %v1808_v35, %v1727_v59 }
 0x2ac   : > { %v2672_v40 = vpop.f32.mrb[86].mxu1  ;;  %v1810_v63 = vadd.f32 %v1809_v61, %v1728_v60 }
 0x2ad   : > { %v1536_v53 = vpop.f32.mrb[87].mxu1  ;;  %v1542_v32 = vadd.f32 %v2672_v40, %v3405_v10 }
 0x2ae   : > { %v1537_v0 = vadd.f32 %v3405_v10, %v1536_v53 }
 0x2af   : > { %v1730_v4 = vmax.f32 %v1542_v32, 0.0 }
 0x2b0   : > { %v1729_v2 = vmax.f32 %v1537_v0, 0.0 }
 0x2b2   : > { %v1811_v57 = vadd.f32 %v1810_v63, %v1729_v2 }
 0x2b4   : > { %v2675_v6 = vpop.f32.mrb[88].mxu1  ;;  %v1812_v7 = vadd.f32 %v1811_v57, %v1730_v4 }
 0x2b5   : > { %v1546_v62 = vpop.f32.mrb[89].mxu1  ;;  %v1552_v8 = vadd.f32 %v2675_v6, %v3405_v10 }
 0x2b6   : > { %v1547_v12 = vadd.f32 %v3405_v10, %v1546_v62 }
 0x2b7   : > { %v1732_v43 = vmax.f32 %v1552_v8, 0.0 }
 0x2b8   : > { %v1731_v13 = vmax.f32 %v1547_v12, 0.0 }
 0x2ba   : > { %v1813_v14 = vadd.f32 %v1812_v7, %v1731_v13 }
 0x2bc   : > { %v2678_v15 = vpop.f32.mrb[90].mxu1  ;;  %v1814_v17 = vadd.f32 %v1813_v14, %v1732_v43 }
 0x2bd   : > { %v1556_v11 = vpop.f32.mrb[91].mxu1  ;;  %v1562_v5 = vadd.f32 %v2678_v15, %v3405_v10 }
 0x2be   : > { %v1557_v3 = vadd.f32 %v3405_v10, %v1556_v11 }
 0x2bf   : > { %v1734_v20 = vmax.f32 %v1562_v5, 0.0 }
 0x2c0   : > { %v1733_v18 = vmax.f32 %v1557_v3, 0.0 }
 0x2c2   : > { %v1815_v21 = vadd.f32 %v1814_v17, %v1733_v18 }
 0x2c4   : > { %v2681_v23 = vpop.f32.mrb[92].mxu1  ;;  %v1816_v25 = vadd.f32 %v1815_v21, %v1734_v20 }
 0x2c5   : > { %v1566_v26 = vpop.f32.mrb[93].mxu1  ;;  %v1572_v9 = vadd.f32 %v2681_v23, %v3405_v10 }
 0x2c6   : > { %v1567_v28 = vadd.f32 %v3405_v10, %v1566_v26 }
 0x2c7   : > { %v1736_v30 = vmax.f32 %v1572_v9, 0.0 }
 0x2c8   : > { %v1735_v16 = vmax.f32 %v1567_v28, 0.0 }
 0x2ca   : > { %v1817_v31 = vadd.f32 %v1816_v25, %v1735_v16 }
 0x2cc   : > { %v2684_v33 = vpop.f32.mrb[94].mxu1  ;;  %v1818_v19 = vadd.f32 %v1817_v31, %v1736_v30 }
 0x2cd   : > { %v1576_v34 = vpop.f32.mrb[95].mxu1  ;;  %v1582_v38 = vadd.f32 %v2684_v33, %v3405_v10 }
 0x2ce   : > { %v1577_v36 = vadd.f32 %v3405_v10, %v1576_v34 }
 0x2cf   : > { %v1738_v22 = vmax.f32 %v1582_v38, 0.0 }
 0x2d0   : > { %v1737_v39 = vmax.f32 %v1577_v36, 0.0 }
 0x2d2   : > { %v1819_v42 = vadd.f32 %v1818_v19, %v1737_v39 }
 0x2d4   : > { %v2687_v29 = vpop.f32.mrb[96].mxu1  ;;  %v1820_v44 = vadd.f32 %v1819_v42, %v1738_v22 }
 0x2d5   : > { %v1586_v46 = vpop.f32.mrb[97].mxu1  ;;  %v1592_v47 = vadd.f32 %v2687_v29, %v3405_v10 }
 0x2d6   : > { %v1587_v48 = vadd.f32 %v3405_v10, %v1586_v46 }
 0x2d7   : > { %v1740_v1 = vmax.f32 %v1592_v47, 0.0 }
 0x2d8   : > { %v1739_v24 = vmax.f32 %v1587_v48, 0.0  ;;  %v2690_v49 = vpop.f32.mrb[98].mxu1 }
 0x2d9   : > { %v1596_v50 = vpop.f32.mrb[99].mxu1  ;;  %v1602_v51 = vadd.f32 %v2690_v49, %v3405_v10 }
 0x2da   : > { %v1821_v37 = vadd.f32 %v1820_v44, %v1739_v24  ;;  %v1597_v41 = vadd.f32 %v3405_v10, %v1596_v50 }
 0x2db   : > { %v1742_v35 = vmax.f32 %v1602_v51, 0.0 }
 0x2dc   : > { %v1741_v52 = vmax.f32 %v1597_v41, 0.0  ;;  %v1822_v54 = vadd.f32 %v1821_v37, %v1740_v1  ;;  %v2693_v55 = vpop.f32.mrb[100].mxu1  ;;  %v1869_v41 = vld [vmem:[%s3620_s4] sm:$0x1] }
 0x2dd   : > { %v1606_v45 = vpop.f32.mrb[101].mxu1  ;;  %v1612_v56 = vadd.f32 %v2693_v55, %v3405_v10 }
 0x2de   : > { %v1823_v27 = vadd.f32 %v1822_v54, %v1741_v52  ;;  %v1607_v58 = vadd.f32 %v3405_v10, %v1606_v45 }
 0x2df   : > { %v1744_v63 = vmax.f32 %v1612_v56, 0.0 }
 0x2e0   : > { %v1743_v59 = vmax.f32 %v1607_v58, 0.0  ;;  %v1824_v60 = vadd.f32 %v1823_v27, %v1742_v35  ;;  %v2696_v61 = vpop.f32.mrb[102].mxu1 }
 0x2e1   : > { %v1616_v40 = vpop.f32.mrb[103].mxu1  ;;  %v1622_v32 = vadd.f32 %v2696_v61, %v3405_v10 }
 0x2e2   : > { %v1825_v53 = vadd.f32 %v1824_v60, %v1743_v59  ;;  %v1617_v0 = vadd.f32 %v3405_v10, %v1616_v40  ;;  %v2045_v40 = vlaneseq }
 0x2e3   : > { %v1746_v7 = vmax.f32 %v1622_v32, 0.0 }
 0x2e4   : > { %v1745_v2 = vmax.f32 %v1617_v0, 0.0  ;;  %v1826_v4 = vadd.f32 %v1825_v53, %v1744_v63  ;;  %v2699_v57 = vpop.f32.mrb[104].mxu1  ;;  %v2046_v63 = vshrl.u32 %v2045_v40, 7  ;;  %v1953_v53 = vld [vmem:[%s3622_s6] sm:$0x1] }
 0x2e5   : > { %v1626_v6 = vpop.f32.mrb[105].mxu1  ;;  %v1632_v8 = vadd.f32 %v2699_v57, %v3405_v10 }
 0x2e6   : > { %v1827_v62 = vadd.f32 %v1826_v4, %v1745_v2  ;;  %v1627_v12 = vadd.f32 %v3405_v10, %v1626_v6  ;;  %v2047_v32 = vsub.s32 0, %v2046_v63 }
 0x2e7   : > { %v1748_v17 = vmax.f32 %v1632_v8, 0.0 }
 0x2e8   : > { %v1747_v13 = vmax.f32 %v1627_v12, 0.0  ;;  %v1828_v43 = vadd.f32 %v1827_v62, %v1746_v7  ;;  %v2702_v14 = vpop.f32.mrb[106].mxu1 }
 0x2e9   : > { %v1636_v15 = vpop.f32.mrb[107].mxu1  ;;  %v1642_v5 = vadd.f32 %v2702_v14, %v3405_v10 }
 0x2ea   : > { %v1829_v11 = vadd.f32 %v1828_v43, %v1747_v13  ;;  %v1637_v3 = vadd.f32 %v3405_v10, %v1636_v15 }
 0x2eb   : > { %v1750_v25 = vmax.f32 %v1642_v5, 0.0 }
 0x2ec   : > { %v1749_v18 = vmax.f32 %v1637_v3, 0.0  ;;  %v1830_v20 = vadd.f32 %v1829_v11, %v1748_v17  ;;  %v2705_v21 = vpop.f32.mrb[108].mxu1 }
 0x2ed   : > { %v1646_v23 = vpop.f32.mrb[109].mxu1  ;;  %v1652_v9 = vadd.f32 %v2705_v21, %v3405_v10 }
 0x2ee   : > { %v1831_v26 = vadd.f32 %v1830_v20, %v1749_v18  ;;  %v1647_v28 = vadd.f32 %v3405_v10, %v1646_v23 }
 0x2ef   : > { %v1752_v19 = vmax.f32 %v1652_v9, 0.0 }
 0x2f0   : > { %v1751_v16 = vmax.f32 %v1647_v28, 0.0  ;;  %v1832_v30 = vadd.f32 %v1831_v26, %v1750_v25  ;;  %v2708_v31 = vpop.f32.mrb[110].mxu1 }
 0x2f1   : > { %v1656_v33 = vpop.f32.mrb[111].mxu1  ;;  %v1662_v38 = vadd.f32 %v2708_v31, %v3405_v10 }
 0x2f2   : > { %v1833_v34 = vadd.f32 %v1832_v30, %v1751_v16  ;;  %v1657_v36 = vadd.f32 %v3405_v10, %v1656_v33 }
 0x2f3   : > { %v1754_v44 = vmax.f32 %v1662_v38, 0.0 }
 0x2f4   : > { %v1753_v39 = vmax.f32 %v1657_v36, 0.0  ;;  %v1834_v22 = vadd.f32 %v1833_v34, %v1752_v19  ;;  %v2711_v42 = vpop.f32.mrb[112].mxu1 }
 0x2f5   : > { %v1666_v29 = vpop.f32.mrb[113].mxu1  ;;  %v1672_v47 = vadd.f32 %v2711_v42, %v3405_v10 }
 0x2f6   : > { %v1835_v46 = vadd.f32 %v1834_v22, %v1753_v39  ;;  %v1667_v48 = vadd.f32 %v3405_v10, %v1666_v29 }
 0x2f7   : > { %v1756_v37 = vmax.f32 %v1672_v47, 0.0 }
 0x2f8   : > { %v1755_v24 = vmax.f32 %v1667_v48, 0.0  ;;  %v1836_v49 = vadd.f32 %v1835_v46, %v1754_v44  ;;  %v1936_v50 = vpop.f32.mrb[114].mxu1 }
 0x2f9   : > { %v2746_v1 = vpop.f32.mrb[115].mxu1  ;;  %v1937_v55 = vadd.f32 %v1936_v50, %v1869_v41 }
 0x2fa   : > { %v1837_v51 = vadd.f32 %v1836_v49, %v1755_v24 }
 0x2fb   : > { %v1940_v27 = vmax.f32 %v1937_v55, 0.0 }
 0x2fc   : > { %v1838_v52 = vadd.f32 %v1837_v51, %v1756_v37 }
 0x2fd   : > { %v1950_v10 = vmul.f32 8.0, %v1940_v27 }
 0x2fe   : > { %v1845_v54 = vrot.slane %v1838_v52, 4 }
 0x300   : > { %v1846_v45 = vadd.f32 %v1845_v54, %v1838_v52 }
 0x302   : > { %v1847_v35 = vrot.slane %v1846_v45, 2 }
 0x304   : > { %v1848_v56 = vadd.f32 %v1847_v35, %v1846_v45 }
 0x306   : > { %v1849_v58 = vrot.slane %v1848_v56, 1 }
 0x308   : > { %v1850_v59 = vadd.f32 %v1849_v58, %v1848_v56 }
 0x30a   : > { %v1951_v60 = vsub.f32 %v1850_v59, %v1950_v10 }
 0x30c   : > { %v1952_v61 = vmul.f32 0.0015432099, %v1951_v60 }
 0x30e   : > { %2780 = vmatmul.mubr.f32.vlgmr.msra.gmra.mrb[116].mxu1 %v1952_v61 }
 0x3e1   : > { %v2041_v0 = vpop.f32.mrb[116].mxu1 }
 0x3e2   : > { %v2042_v2 = vadd.f32 %v2041_v0, %v1953_v53  ;;  %v2781_v4 = vpop.f32.mrb[117].mxu1 }
 0x3e4   : > { %v2048_v57 = vrot.slane %v2042_v2, %v2047_v32 }
 0x3e6   : > { %2049 = vst [vmem:[%s328_s19] sm:$0xff] %v2048_v57 }
 0x3e7 PF: > { %s17_s26 = sadd.s32 1, %s2978_s26   ;;  %s3624_s24 = smov %s2974_s25 }
 0x3e8   : > { %p14_p5 = scmp.ge.s32.totalorder %s17_s26, 4   ;;  %s3625_s25 = smov %s3627_s27 }
 0x3ea   :  { %16 = sbr.rel (!%p14_p5) target bundleno = 2 (0x2), region = 86 }

</bundles_post_ra>
